<compile_context>
chip_gen: v7x
topology: tpu7x:2x2x1
jax: 0.10.0
libtpu: 0.0.40
codegen_flags: <defaults>
</compile_context>

<pallas_src>
import jax
import jax.numpy as jnp
from jax import lax
from jax.experimental import pallas as pl
from jax.experimental.pallas import tpu as pltpu


# ----------------------------- fused GRU kernel ------------------------------
def _make_gru_kernel(depth, T, B, H, unroll):
    """Builds the fused kernel.

    Ref order:
      x(TB,in), (w_ih_t, w_hh_t, b_gi, b_hn) * depth, w_fc_t, b_fc,   # inputs
      out(B,O),                                                       # output
      gi_sc(TB,3H), seq_a(TB,H), seq_b(TB,H)                          # scratch
    """

    def kernel(*refs):
        x_ref = refs[0]
        w_fc_ref = refs[1 + 4 * depth]
        b_fc_ref = refs[2 + 4 * depth]
        out_ref = refs[3 + 4 * depth]
        gi_sc = refs[4 + 4 * depth]
        seq_sc = (refs[5 + 4 * depth], refs[6 + 4 * depth])

        h_last = jnp.zeros((B, H), jnp.float32)
        for layer in range(depth):
            w_ih_ref, w_hh_ref, b_gi_ref, b_hn_ref = refs[1 + 4 * layer:5 + 4 * layer]
            in_ref = x_ref if layer == 0 else seq_sc[(layer - 1) % 2]
            out_seq_ref = None if layer == depth - 1 else seq_sc[layer % 2]

            # Weights / biases loaded once per layer (resident values).
            w_ih = w_ih_ref[...]          # (in, 3H)
            w_hh = w_hh_ref[...]          # (H, 3H)
            b_gi = b_gi_ref[...]          # (1, 3H): [b_ir+b_hr, b_iz+b_hz, b_in]
            # Hoisted broadcast: done once per layer, not once per unrolled step.
            b_hn = jnp.broadcast_to(b_hn_ref[...], (B, H))   # (B, H)

            # ---- Phase 1: ALL input projections in one batched MXU matmul. ----
            # (r/z biases and b_in are already folded into b_gi.)
            gi_sc[...] = (
                jnp.dot(in_ref[...], w_ih, preferred_element_type=jnp.float32)
                + b_gi
            )

            # ---- Phase 2: recurrence. One MXU matmul per step on the chain. ----
            def step(t, h):
                row = t * B
                gi = gi_sc[pl.ds(row, B), :]                              # (B, 3H)
                gh = jnp.dot(h, w_hh, preferred_element_type=jnp.float32)  # (B, 3H)
                # One sigmoid over the concatenated r|z pre-activations.
                rz = jax.nn.sigmoid(gi[:, :2 * H] + gh[:, :2 * H])         # (B, 2H)
                r = rz[:, :H]
                z = rz[:, H:]
                n = jnp.tanh(gi[:, 2 * H:] + r * (gh[:, 2 * H:] + b_hn))
                h_new = n + z * (h - n)          # == (1 - z) * n + z * h
                if out_seq_ref is not None:
                    out_seq_ref[pl.ds(row, B), :] = h_new
                return h_new

            h_last = lax.fori_loop(
                0, T, step, jnp.zeros((B, H), jnp.float32), unroll=unroll
            )

        # Final FC on the last layer's last hidden state.
        out_ref[...] = (
            jnp.dot(h_last, w_fc_ref[...], preferred_element_type=jnp.float32)
            + b_fc_ref[...]
        ).astype(out_ref.dtype)

    return kernel


# ------------------------------- wrapper --------------------------------------
def _gru_v0_pallas(params, x_bti):
    """x_bti: (B, T, I) batch_first, like the PyTorch module. Returns (B, O)."""
    depth = len(params["gru"])
    B, T, I = x_bti.shape
    H = params["gru"][0]["w_hh_t"].shape[0]
    O = params["fc"]["w_t"].shape[1]
    TB = T * B

    # time-major then flatten (T, B) -> rows: all in-kernel matmuls are 2-D.
    x_2d = jnp.transpose(x_bti, (1, 0, 2)).reshape(TB, I).astype(jnp.float32)

    inputs = [x_2d]
    in_specs = [pl.BlockSpec((TB, I), lambda: (0, 0))]
    for lp in params["gru"]:
        in_sz = lp["w_ih_t"].shape[0]
        b_ih = lp["b_ih"].astype(jnp.float32)
        b_hh = lp["b_hh"].astype(jnp.float32)
        # Pre-fuse r/z biases; b_hn stays separate (it is gated by r in the n gate).
        b_gi = jnp.concatenate(
            [b_ih[:, :2 * H] + b_hh[:, :2 * H], b_ih[:, 2 * H:]], axis=1)  # (1, 3H)
        b_hn = b_hh[:, 2 * H:]                                             # (1, H)
        inputs += [
            lp["w_ih_t"].astype(jnp.float32),
            lp["w_hh_t"].astype(jnp.float32),
            b_gi,
            b_hn,
        ]
        in_specs += [
            pl.BlockSpec((in_sz, 3 * H), lambda: (0, 0)),
            pl.BlockSpec((H, 3 * H), lambda: (0, 0)),
            pl.BlockSpec((1, 3 * H), lambda: (0, 0)),
            pl.BlockSpec((1, H), lambda: (0, 0)),
        ]
    inputs += [
        params["fc"]["w_t"].astype(jnp.float32),
        params["fc"]["b"].astype(jnp.float32),
    ]
    in_specs += [
        pl.BlockSpec((H, O), lambda: (0, 0)),
        pl.BlockSpec((1, O), lambda: (0, 0)),
    ]

    # Full unroll only while T is small; partial unroll keeps vreg pressure sane.
    unroll = True if T <= 16 else 8

    kernel = _make_gru_kernel(depth, T, B, H, unroll)

    # Explicit VMEM budget: scratch + operands + output, with 2x headroom,
    # clamped to limits that are safe on v5e/v6e/v7x at these shapes.
    scratch_bytes = 4 * (TB * 3 * H + 2 * TB * H)
    operand_bytes = 4 * sum(int(a.size) for a in inputs)
    out_bytes = 4 * B * O
    vmem_limit = int(
        min(64 * 1024 * 1024,
            max(16 * 1024 * 1024,
                2 * (scratch_bytes + operand_bytes + out_bytes)))
    )

    return pl.pallas_call(
        kernel,
        out_shape=jax.ShapeDtypeStruct((B, O), jnp.float32),
        in_specs=in_specs,
        out_specs=pl.BlockSpec((B, O), lambda: (0, 0)),
        scratch_shapes=[
            pltpu.VMEM((TB, 3 * H), jnp.float32),  # cached input projections
            pltpu.VMEM((TB, H), jnp.float32),      # inter-layer hidden seq (ping)
            pltpu.VMEM((TB, H), jnp.float32),      # inter-layer hidden seq (pong)
        ],
        compiler_params=pltpu.CompilerParams(vmem_limit_bytes=vmem_limit),
    )(*inputs)


gru_v0_forward = jax.jit(_gru_v0_pallas)


# ------------------------------ params / reference ----------------------------
def init_params(key, input_size, hidden_size, output_size, depth_number):
    """Mimics torch.nn.GRU / nn.Linear init: uniform(-1/sqrt(H), 1/sqrt(H))."""
    params = {"gru": [], "fc": None}
    bound = 1.0 / jnp.sqrt(jnp.float32(hidden_size))
    for layer in range(depth_number):
        in_sz = input_size if layer == 0 else hidden_size
        key, k1, k2, k3, k4 = jax.random.split(key, 5)
        w_ih = jax.random.uniform(k1, (3 * hidden_size, in_sz), jnp.float32, -bound, bound)
        w_hh = jax.random.uniform(k2, (3 * hidden_size, hidden_size), jnp.float32, -bound, bound)
        b_ih = jax.random.uniform(k3, (3 * hidden_size,), jnp.float32, -bound, bound)
        b_hh = jax.random.uniform(k4, (3 * hidden_size,), jnp.float32, -bound, bound)
        params["gru"].append(
            {
                "w_ih_t": w_ih.T,            # (in, 3H)
                "w_hh_t": w_hh.T,            # (H, 3H)
                "b_ih": b_ih[None, :],       # (1, 3H)
                "b_hh": b_hh[None, :],       # (1, 3H)
            }
        )
    key, k1, k2 = jax.random.split(key, 3)
    w_fc = jax.random.uniform(k1, (output_size, hidden_size), jnp.float32, -bound, bound)
    b_fc = jax.random.uniform(k2, (output_size,), jnp.float32, -bound, bound)
    params["fc"] = {"w_t": w_fc.T, "b": b_fc[None, :]}   # (H, O), (1, O)
    return params


def gru_v0_reference(params, x_bti):
    """Pure-jnp reference matching torch.nn.GRU + Linear semantics."""
    x = x_bti.astype(jnp.float32)
    B, T, _ = x.shape
    seq = x
    for lp in params["gru"]:
        H = lp["w_hh_t"].shape[0]
        h = jnp.zeros((B, H), jnp.float32)
        outs = []
        for t in range(T):
            gi = seq[:, t, :] @ lp["w_ih_t"] + lp["b_ih"]
            gh = h @ lp["w_hh_t"] + lp["b_hh"]
            r = jax.nn.sigmoid(gi[:, 0:H] + gh[:, 0:H])
            z = jax.nn.sigmoid(gi[:, H:2 * H] + gh[:, H:2 * H])
            n = jnp.tanh(gi[:, 2 * H:3 * H] + r * gh[:, 2 * H:3 * H])
            h = (1.0 - z) * n + z * h
            outs.append(h)
        seq = jnp.stack(outs, axis=1)
    return seq[:, -1, :] @ params["fc"]["w_t"] + params["fc"]["b"]


if __name__ == "__main__":
    # Small shapes consistent with the module's forward: x is (B, T, input_size).
    B, T, INPUT, HIDDEN, OUTPUT, DEPTH = 2, 8, 16, 32, 8, 2

    key = jax.random.PRNGKey(0)
    k_param, k_x = jax.random.split(key)
    params = init_params(k_param, INPUT, HIDDEN, OUTPUT, DEPTH)
    x = jax.random.normal(k_x, (B, T, INPUT), jnp.float32)

    out = gru_v0_forward(params, x)
    jax.block_until_ready(out)
    assert out.shape == (B, OUTPUT)

    ref = gru_v0_reference(params, x)
    assert bool(jnp.allclose(out, ref, atol=1e-4, rtol=1e-4)), "mismatch vs reference"

    print("KERNEL_OK")
</pallas_src>

<mosaic_0001>
module attributes {stable_mosaic.version = 11 : i64} {
  func.func @kernel(%arg0: memref<16x16xf32, #tpu.memory_space<vmem>>, %arg1: memref<16x96xf32, #tpu.memory_space<vmem>>, %arg2: memref<32x96xf32, #tpu.memory_space<vmem>>, %arg3: memref<1x96xf32, #tpu.memory_space<vmem>>, %arg4: memref<1x32xf32, #tpu.memory_space<vmem>>, %arg5: memref<32x96xf32, #tpu.memory_space<vmem>>, %arg6: memref<32x96xf32, #tpu.memory_space<vmem>>, %arg7: memref<1x96xf32, #tpu.memory_space<vmem>>, %arg8: memref<1x32xf32, #tpu.memory_space<vmem>>, %arg9: memref<32x8xf32, #tpu.memory_space<vmem>>, %arg10: memref<1x8xf32, #tpu.memory_space<vmem>>, %arg11: memref<2x8xf32, #tpu.memory_space<vmem>>, %arg12: memref<16x96xf32, #tpu.memory_space<vmem>>, %arg13: memref<16x32xf32, #tpu.memory_space<vmem>>, %arg14: memref<16x32xf32, #tpu.memory_space<vmem>>) attributes {dimension_semantics = [], scalar_prefetch = 0 : i64, scratch_operands = 3 : i64, tpu.core_type = #tpu.core_type<tc>} {
    %c0 = arith.constant 0 : index
    %c0_0 = arith.constant 0 : index
    %0 = vector.load %arg1[%c0, %c0_0] : memref<16x96xf32, #tpu.memory_space<vmem>>, vector<16x96xf32>
    %c0_1 = arith.constant 0 : index
    %c0_2 = arith.constant 0 : index
    %1 = vector.load %arg2[%c0_1, %c0_2] : memref<32x96xf32, #tpu.memory_space<vmem>>, vector<32x96xf32>
    %c0_3 = arith.constant 0 : index
    %c0_4 = arith.constant 0 : index
    %2 = vector.load %arg3[%c0_3, %c0_4] : memref<1x96xf32, #tpu.memory_space<vmem>>, vector<1x96xf32>
    %c0_5 = arith.constant 0 : index
    %c0_6 = arith.constant 0 : index
    %3 = vector.load %arg4[%c0_5, %c0_6] : memref<1x32xf32, #tpu.memory_space<vmem>>, vector<1x32xf32>
    %4 = vector.shape_cast %3 : vector<1x32xf32> to vector<1x32xf32>
    %5 = vector.broadcast %4 : vector<1x32xf32> to vector<2x32xf32>
    %c0_7 = arith.constant 0 : index
    %c0_8 = arith.constant 0 : index
    %6 = vector.load %arg0[%c0_7, %c0_8] : memref<16x16xf32, #tpu.memory_space<vmem>>, vector<16x16xf32>
    %cst = arith.constant dense<0.000000e+00> : vector<16x96xf32>
    %7 = tpu.matmul %6, %0, %cst {dimension_numbers = #tpu.dot_dimension_numbers<[1], [0], [0], [1], [0, 0, 1, 1], [], []>} : vector<16x16xf32>, vector<16x96xf32>, vector<16x96xf32> -> vector<16x96xf32>
    %8 = vector.broadcast %2 : vector<1x96xf32> to vector<16x96xf32>
    %9 = arith.addf %7, %8 : vector<16x96xf32>
    %c0_9 = arith.constant 0 : index
    %c0_10 = arith.constant 0 : index
    %10 = vector.load %arg12[%c0_9, %c0_10] : memref<16x96xf32, #tpu.memory_space<vmem>>, vector<16x96xf32>
    tpu.vector_store %arg12[%c0_9, %c0_10], %9 {strides = array<i32>} : memref<16x96xf32, #tpu.memory_space<vmem>>, vector<16x96xf32>,
    %cst_11 = arith.constant 0.000000e+00 : f32
    %11 = vector.broadcast %cst_11 : f32 to vector<2x32xf32>
    %c0_i32 = arith.constant 0 : i32
    %c2_i32 = arith.constant 2 : i32
    %12 = arith.muli %c0_i32, %c2_i32 : i32
    %13 = arith.index_cast %12 : i32 to index
    %c0_12 = arith.constant 0 : index
    %14 = vector.load %arg12[%13, %c0_12] : memref<16x96xf32, #tpu.memory_space<vmem>>, vector<2x96xf32>
    %cst_13 = arith.constant dense<0.000000e+00> : vector<2x96xf32>
    %15 = tpu.matmul %11, %1, %cst_13 {dimension_numbers = #tpu.dot_dimension_numbers<[1], [0], [0], [1], [0, 0, 1, 1], [], []>} : vector<2x32xf32>, vector<32x96xf32>, vector<2x96xf32> -> vector<2x96xf32>
    %16 = vector.extract_strided_slice %14 {offsets = [0, 0], sizes = [2, 64], strides = [1, 1]} : vector<2x96xf32> to vector<2x64xf32>
    %17 = vector.extract_strided_slice %15 {offsets = [0, 0], sizes = [2, 64], strides = [1, 1]} : vector<2x96xf32> to vector<2x64xf32>
    %18 = arith.addf %16, %17 : vector<2x64xf32>
    %19 = arith.negf %18 : vector<2x64xf32>
    %20 = math.exp %19 : vector<2x64xf32>
    %cst_14 = arith.constant 1.000000e+00 : f32
    %21 = vector.broadcast %cst_14 : f32 to vector<2x64xf32>
    %22 = arith.addf %21, %20 : vector<2x64xf32>
    %23 = arith.divf %21, %22 : vector<2x64xf32>
    %24 = vector.extract_strided_slice %23 {offsets = [0, 0], sizes = [2, 32], strides = [1, 1]} : vector<2x64xf32> to vector<2x32xf32>
    %25 = vector.extract_strided_slice %23 {offsets = [0, 32], sizes = [2, 32], strides = [1, 1]} : vector<2x64xf32> to vector<2x32xf32>
    %26 = vector.extract_strided_slice %14 {offsets = [0, 64], sizes = [2, 32], strides = [1, 1]} : vector<2x96xf32> to vector<2x32xf32>
    %27 = vector.extract_strided_slice %15 {offsets = [0, 64], sizes = [2, 32], strides = [1, 1]} : vector<2x96xf32> to vector<2x32xf32>
    %28 = arith.addf %27, %5 : vector<2x32xf32>
    %29 = arith.mulf %24, %28 : vector<2x32xf32>
    %30 = arith.addf %26, %29 : vector<2x32xf32>
    %31 = math.tanh %30 : vector<2x32xf32>
    %32 = arith.subf %11, %31 : vector<2x32xf32>
    %33 = arith.mulf %25, %32 : vector<2x32xf32>
    %34 = arith.addf %31, %33 : vector<2x32xf32>
    %35 = arith.index_cast %12 : i32 to index
    %c0_15 = arith.constant 0 : index
    %36 = vector.load %arg13[%35, %c0_15] : memref<16x32xf32, #tpu.memory_space<vmem>>, vector<2x32xf32>
    tpu.vector_store %arg13[%35, %c0_15], %34 {strides = array<i32>} : memref<16x32xf32, #tpu.memory_space<vmem>>, vector<2x32xf32>,
    %c1_i32 = arith.constant 1 : i32
    %c2_i32_16 = arith.constant 2 : i32
    %37 = arith.muli %c1_i32, %c2_i32_16 : i32
    %38 = arith.index_cast %37 : i32 to index
    %c0_17 = arith.constant 0 : index
    %39 = vector.load %arg12[%38, %c0_17] : memref<16x96xf32, #tpu.memory_space<vmem>>, vector<2x96xf32>
    %cst_18 = arith.constant dense<0.000000e+00> : vector<2x96xf32>
    %40 = tpu.matmul %34, %1, %cst_18 {dimension_numbers = #tpu.dot_dimension_numbers<[1], [0], [0], [1], [0, 0, 1, 1], [], []>} : vector<2x32xf32>, vector<32x96xf32>, vector<2x96xf32> -> vector<2x96xf32>
    %41 = vector.extract_strided_slice %39 {offsets = [0, 0], sizes = [2, 64], strides = [1, 1]} : vector<2x96xf32> to vector<2x64xf32>
    %42 = vector.extract_strided_slice %40 {offsets = [0, 0], sizes = [2, 64], strides = [1, 1]} : vector<2x96xf32> to vector<2x64xf32>
    %43 = arith.addf %41, %42 : vector<2x64xf32>
    %44 = arith.negf %43 : vector<2x64xf32>
    %45 = math.exp %44 : vector<2x64xf32>
    %cst_19 = arith.constant 1.000000e+00 : f32
    %46 = vector.broadcast %cst_19 : f32 to vector<2x64xf32>
    %47 = arith.addf %46, %45 : vector<2x64xf32>
    %48 = arith.divf %46, %47 : vector<2x64xf32>
    %49 = vector.extract_strided_slice %48 {offsets = [0, 0], sizes = [2, 32], strides = [1, 1]} : vector<2x64xf32> to vector<2x32xf32>
    %50 = vector.extract_strided_slice %48 {offsets = [0, 32], sizes = [2, 32], strides = [1, 1]} : vector<2x64xf32> to vector<2x32xf32>
    %51 = vector.extract_strided_slice %39 {offsets = [0, 64], sizes = [2, 32], strides = [1, 1]} : vector<2x96xf32> to vector<2x32xf32>
    %52 = vector.extract_strided_slice %40 {offsets = [0, 64], sizes = [2, 32], strides = [1, 1]} : vector<2x96xf32> to vector<2x32xf32>
    %53 = arith.addf %52, %5 : vector<2x32xf32>
    %54 = arith.mulf %49, %53 : vector<2x32xf32>
    %55 = arith.addf %51, %54 : vector<2x32xf32>
    %56 = math.tanh %55 : vector<2x32xf32>
    %57 = arith.subf %34, %56 : vector<2x32xf32>
    %58 = arith.mulf %50, %57 : vector<2x32xf32>
    %59 = arith.addf %56, %58 : vector<2x32xf32>
    %60 = arith.index_cast %37 : i32 to index
    %c0_20 = arith.constant 0 : index
    %61 = vector.load %arg13[%60, %c0_20] : memref<16x32xf32, #tpu.memory_space<vmem>>, vector<2x32xf32>
    tpu.vector_store %arg13[%60, %c0_20], %59 {strides = array<i32>} : memref<16x32xf32, #tpu.memory_space<vmem>>, vector<2x32xf32>,
    %c2_i32_21 = arith.constant 2 : i32
    %c2_i32_22 = arith.constant 2 : i32
    %62 = arith.muli %c2_i32_21, %c2_i32_22 : i32
    %63 = arith.index_cast %62 : i32 to index
    %c0_23 = arith.constant 0 : index
    %64 = vector.load %arg12[%63, %c0_23] : memref<16x96xf32, #tpu.memory_space<vmem>>, vector<2x96xf32>
    %cst_24 = arith.constant dense<0.000000e+00> : vector<2x96xf32>
    %65 = tpu.matmul %59, %1, %cst_24 {dimension_numbers = #tpu.dot_dimension_numbers<[1], [0], [0], [1], [0, 0, 1, 1], [], []>} : vector<2x32xf32>, vector<32x96xf32>, vector<2x96xf32> -> vector<2x96xf32>
    %66 = vector.extract_strided_slice %64 {offsets = [0, 0], sizes = [2, 64], strides = [1, 1]} : vector<2x96xf32> to vector<2x64xf32>
    %67 = vector.extract_strided_slice %65 {offsets = [0, 0], sizes = [2, 64], strides = [1, 1]} : vector<2x96xf32> to vector<2x64xf32>
    %68 = arith.addf %66, %67 : vector<2x64xf32>
    %69 = arith.negf %68 : vector<2x64xf32>
    %70 = math.exp %69 : vector<2x64xf32>
    %cst_25 = arith.constant 1.000000e+00 : f32
    %71 = vector.broadcast %cst_25 : f32 to vector<2x64xf32>
    %72 = arith.addf %71, %70 : vector<2x64xf32>
    %73 = arith.divf %71, %72 : vector<2x64xf32>
    %74 = vector.extract_strided_slice %73 {offsets = [0, 0], sizes = [2, 32], strides = [1, 1]} : vector<2x64xf32> to vector<2x32xf32>
    %75 = vector.extract_strided_slice %73 {offsets = [0, 32], sizes = [2, 32], strides = [1, 1]} : vector<2x64xf32> to vector<2x32xf32>
    %76 = vector.extract_strided_slice %64 {offsets = [0, 64], sizes = [2, 32], strides = [1, 1]} : vector<2x96xf32> to vector<2x32xf32>
    %77 = vector.extract_strided_slice %65 {offsets = [0, 64], sizes = [2, 32], strides = [1, 1]} : vector<2x96xf32> to vector<2x32xf32>
    %78 = arith.addf %77, %5 : vector<2x32xf32>
    %79 = arith.mulf %74, %78 : vector<2x32xf32>
    %80 = arith.addf %76, %79 : vector<2x32xf32>
    %81 = math.tanh %80 : vector<2x32xf32>
    %82 = arith.subf %59, %81 : vector<2x32xf32>
    %83 = arith.mulf %75, %82 : vector<2x32xf32>
    %84 = arith.addf %81, %83 : vector<2x32xf32>
    %85 = arith.index_cast %62 : i32 to index
    %c0_26 = arith.constant 0 : index
    %86 = vector.load %arg13[%85, %c0_26] : memref<16x32xf32, #tpu.memory_space<vmem>>, vector<2x32xf32>
    tpu.vector_store %arg13[%85, %c0_26], %84 {strides = array<i32>} : memref<16x32xf32, #tpu.memory_space<vmem>>, vector<2x32xf32>,
    %c3_i32 = arith.constant 3 : i32
    %c2_i32_27 = arith.constant 2 : i32
    %87 = arith.muli %c3_i32, %c2_i32_27 : i32
    %88 = arith.index_cast %87 : i32 to index
    %c0_28 = arith.constant 0 : index
    %89 = vector.load %arg12[%88, %c0_28] : memref<16x96xf32, #tpu.memory_space<vmem>>, vector<2x96xf32>
    %cst_29 = arith.constant dense<0.000000e+00> : vector<2x96xf32>
    %90 = tpu.matmul %84, %1, %cst_29 {dimension_numbers = #tpu.dot_dimension_numbers<[1], [0], [0], [1], [0, 0, 1, 1], [], []>} : vector<2x32xf32>, vector<32x96xf32>, vector<2x96xf32> -> vector<2x96xf32>
    %91 = vector.extract_strided_slice %89 {offsets = [0, 0], sizes = [2, 64], strides = [1, 1]} : vector<2x96xf32> to vector<2x64xf32>
    %92 = vector.extract_strided_slice %90 {offsets = [0, 0], sizes = [2, 64], strides = [1, 1]} : vector<2x96xf32> to vector<2x64xf32>
    %93 = arith.addf %91, %92 : vector<2x64xf32>
    %94 = arith.negf %93 : vector<2x64xf32>
    %95 = math.exp %94 : vector<2x64xf32>
    %cst_30 = arith.constant 1.000000e+00 : f32
    %96 = vector.broadcast %cst_30 : f32 to vector<2x64xf32>
    %97 = arith.addf %96, %95 : vector<2x64xf32>
    %98 = arith.divf %96, %97 : vector<2x64xf32>
    %99 = vector.extract_strided_slice %98 {offsets = [0, 0], sizes = [2, 32], strides = [1, 1]} : vector<2x64xf32> to vector<2x32xf32>
    %100 = vector.extract_strided_slice %98 {offsets = [0, 32], sizes = [2, 32], strides = [1, 1]} : vector<2x64xf32> to vector<2x32xf32>
    %101 = vector.extract_strided_slice %89 {offsets = [0, 64], sizes = [2, 32], strides = [1, 1]} : vector<2x96xf32> to vector<2x32xf32>
    %102 = vector.extract_strided_slice %90 {offsets = [0, 64], sizes = [2, 32], strides = [1, 1]} : vector<2x96xf32> to vector<2x32xf32>
    %103 = arith.addf %102, %5 : vector<2x32xf32>
    %104 = arith.mulf %99, %103 : vector<2x32xf32>
    %105 = arith.addf %101, %104 : vector<2x32xf32>
    %106 = math.tanh %105 : vector<2x32xf32>
    %107 = arith.subf %84, %106 : vector<2x32xf32>
    %108 = arith.mulf %100, %107 : vector<2x32xf32>
    %109 = arith.addf %106, %108 : vector<2x32xf32>
    %110 = arith.index_cast %87 : i32 to index
    %c0_31 = arith.constant 0 : index
    %111 = vector.load %arg13[%110, %c0_31] : memref<16x32xf32, #tpu.memory_space<vmem>>, vector<2x32xf32>
    tpu.vector_store %arg13[%110, %c0_31], %109 {strides = array<i32>} : memref<16x32xf32, #tpu.memory_space<vmem>>, vector<2x32xf32>,
    %c4_i32 = arith.constant 4 : i32
    %c2_i32_32 = arith.constant 2 : i32
    %112 = arith.muli %c4_i32, %c2_i32_32 : i32
    %113 = arith.index_cast %112 : i32 to index
    %c0_33 = arith.constant 0 : index
    %114 = vector.load %arg12[%113, %c0_33] : memref<16x96xf32, #tpu.memory_space<vmem>>, vector<2x96xf32>
    %cst_34 = arith.constant dense<0.000000e+00> : vector<2x96xf32>
    %115 = tpu.matmul %109, %1, %cst_34 {dimension_numbers = #tpu.dot_dimension_numbers<[1], [0], [0], [1], [0, 0, 1, 1], [], []>} : vector<2x32xf32>, vector<32x96xf32>, vector<2x96xf32> -> vector<2x96xf32>
    %116 = vector.extract_strided_slice %114 {offsets = [0, 0], sizes = [2, 64], strides = [1, 1]} : vector<2x96xf32> to vector<2x64xf32>
    %117 = vector.extract_strided_slice %115 {offsets = [0, 0], sizes = [2, 64], strides = [1, 1]} : vector<2x96xf32> to vector<2x64xf32>
    %118 = arith.addf %116, %117 : vector<2x64xf32>
    %119 = arith.negf %118 : vector<2x64xf32>
    %120 = math.exp %119 : vector<2x64xf32>
    %cst_35 = arith.constant 1.000000e+00 : f32
    %121 = vector.broadcast %cst_35 : f32 to vector<2x64xf32>
    %122 = arith.addf %121, %120 : vector<2x64xf32>
    %123 = arith.divf %121, %122 : vector<2x64xf32>
    %124 = vector.extract_strided_slice %123 {offsets = [0, 0], sizes = [2, 32], strides = [1, 1]} : vector<2x64xf32> to vector<2x32xf32>
    %125 = vector.extract_strided_slice %123 {offsets = [0, 32], sizes = [2, 32], strides = [1, 1]} : vector<2x64xf32> to vector<2x32xf32>
    %126 = vector.extract_strided_slice %114 {offsets = [0, 64], sizes = [2, 32], strides = [1, 1]} : vector<2x96xf32> to vector<2x32xf32>
    %127 = vector.extract_strided_slice %115 {offsets = [0, 64], sizes = [2, 32], strides = [1, 1]} : vector<2x96xf32> to vector<2x32xf32>
    %128 = arith.addf %127, %5 : vector<2x32xf32>
    %129 = arith.mulf %124, %128 : vector<2x32xf32>
    %130 = arith.addf %126, %129 : vector<2x32xf32>
    %131 = math.tanh %130 : vector<2x32xf32>
    %132 = arith.subf %109, %131 : vector<2x32xf32>
    %133 = arith.mulf %125, %132 : vector<2x32xf32>
    %134 = arith.addf %131, %133 : vector<2x32xf32>
    %135 = arith.index_cast %112 : i32 to index
    %c0_36 = arith.constant 0 : index
    %136 = vector.load %arg13[%135, %c0_36] : memref<16x32xf32, #tpu.memory_space<vmem>>, vector<2x32xf32>
    tpu.vector_store %arg13[%135, %c0_36], %134 {strides = array<i32>} : memref<16x32xf32, #tpu.memory_space<vmem>>, vector<2x32xf32>,
    %c5_i32 = arith.constant 5 : i32
    %c2_i32_37 = arith.constant 2 : i32
    %137 = arith.muli %c5_i32, %c2_i32_37 : i32
    %138 = arith.index_cast %137 : i32 to index
    %c0_38 = arith.constant 0 : index
    %139 = vector.load %arg12[%138, %c0_38] : memref<16x96xf32, #tpu.memory_space<vmem>>, vector<2x96xf32>
    %cst_39 = arith.constant dense<0.000000e+00> : vector<2x96xf32>
    %140 = tpu.matmul %134, %1, %cst_39 {dimension_numbers = #tpu.dot_dimension_numbers<[1], [0], [0], [1], [0, 0, 1, 1], [], []>} : vector<2x32xf32>, vector<32x96xf32>, vector<2x96xf32> -> vector<2x96xf32>
    %141 = vector.extract_strided_slice %139 {offsets = [0, 0], sizes = [2, 64], strides = [1, 1]} : vector<2x96xf32> to vector<2x64xf32>
    %142 = vector.extract_strided_slice %140 {offsets = [0, 0], sizes = [2, 64], strides = [1, 1]} : vector<2x96xf32> to vector<2x64xf32>
    %143 = arith.addf %141, %142 : vector<2x64xf32>
    %144 = arith.negf %143 : vector<2x64xf32>
    %145 = math.exp %144 : vector<2x64xf32>
    %cst_40 = arith.constant 1.000000e+00 : f32
    %146 = vector.broadcast %cst_40 : f32 to vector<2x64xf32>
    %147 = arith.addf %146, %145 : vector<2x64xf32>
    %148 = arith.divf %146, %147 : vector<2x64xf32>
    %149 = vector.extract_strided_slice %148 {offsets = [0, 0], sizes = [2, 32], strides = [1, 1]} : vector<2x64xf32> to vector<2x32xf32>
    %150 = vector.extract_strided_slice %148 {offsets = [0, 32], sizes = [2, 32], strides = [1, 1]} : vector<2x64xf32> to vector<2x32xf32>
    %151 = vector.extract_strided_slice %139 {offsets = [0, 64], sizes = [2, 32], strides = [1, 1]} : vector<2x96xf32> to vector<2x32xf32>
    %152 = vector.extract_strided_slice %140 {offsets = [0, 64], sizes = [2, 32], strides = [1, 1]} : vector<2x96xf32> to vector<2x32xf32>
    %153 = arith.addf %152, %5 : vector<2x32xf32>
    %154 = arith.mulf %149, %153 : vector<2x32xf32>
    %155 = arith.addf %151, %154 : vector<2x32xf32>
    %156 = math.tanh %155 : vector<2x32xf32>
    %157 = arith.subf %134, %156 : vector<2x32xf32>
    %158 = arith.mulf %150, %157 : vector<2x32xf32>
    %159 = arith.addf %156, %158 : vector<2x32xf32>
    %160 = arith.index_cast %137 : i32 to index
    %c0_41 = arith.constant 0 : index
    %161 = vector.load %arg13[%160, %c0_41] : memref<16x32xf32, #tpu.memory_space<vmem>>, vector<2x32xf32>
    tpu.vector_store %arg13[%160, %c0_41], %159 {strides = array<i32>} : memref<16x32xf32, #tpu.memory_space<vmem>>, vector<2x32xf32>,
    %c6_i32 = arith.constant 6 : i32
    %c2_i32_42 = arith.constant 2 : i32
    %162 = arith.muli %c6_i32, %c2_i32_42 : i32
    %163 = arith.index_cast %162 : i32 to index
    %c0_43 = arith.constant 0 : index
    %164 = vector.load %arg12[%163, %c0_43] : memref<16x96xf32, #tpu.memory_space<vmem>>, vector<2x96xf32>
    %cst_44 = arith.constant dense<0.000000e+00> : vector<2x96xf32>
    %165 = tpu.matmul %159, %1, %cst_44 {dimension_numbers = #tpu.dot_dimension_numbers<[1], [0], [0], [1], [0, 0, 1, 1], [], []>} : vector<2x32xf32>, vector<32x96xf32>, vector<2x96xf32> -> vector<2x96xf32>
    %166 = vector.extract_strided_slice %164 {offsets = [0, 0], sizes = [2, 64], strides = [1, 1]} : vector<2x96xf32> to vector<2x64xf32>
    %167 = vector.extract_strided_slice %165 {offsets = [0, 0], sizes = [2, 64], strides = [1, 1]} : vector<2x96xf32> to vector<2x64xf32>
    %168 = arith.addf %166, %167 : vector<2x64xf32>
    %169 = arith.negf %168 : vector<2x64xf32>
    %170 = math.exp %169 : vector<2x64xf32>
    %cst_45 = arith.constant 1.000000e+00 : f32
    %171 = vector.broadcast %cst_45 : f32 to vector<2x64xf32>
    %172 = arith.addf %171, %170 : vector<2x64xf32>
    %173 = arith.divf %171, %172 : vector<2x64xf32>
    %174 = vector.extract_strided_slice %173 {offsets = [0, 0], sizes = [2, 32], strides = [1, 1]} : vector<2x64xf32> to vector<2x32xf32>
    %175 = vector.extract_strided_slice %173 {offsets = [0, 32], sizes = [2, 32], strides = [1, 1]} : vector<2x64xf32> to vector<2x32xf32>
    %176 = vector.extract_strided_slice %164 {offsets = [0, 64], sizes = [2, 32], strides = [1, 1]} : vector<2x96xf32> to vector<2x32xf32>
    %177 = vector.extract_strided_slice %165 {offsets = [0, 64], sizes = [2, 32], strides = [1, 1]} : vector<2x96xf32> to vector<2x32xf32>
    %178 = arith.addf %177, %5 : vector<2x32xf32>
    %179 = arith.mulf %174, %178 : vector<2x32xf32>
    %180 = arith.addf %176, %179 : vector<2x32xf32>
    %181 = math.tanh %180 : vector<2x32xf32>
    %182 = arith.subf %159, %181 : vector<2x32xf32>
    %183 = arith.mulf %175, %182 : vector<2x32xf32>
    %184 = arith.addf %181, %183 : vector<2x32xf32>
    %185 = arith.index_cast %162 : i32 to index
    %c0_46 = arith.constant 0 : index
    %186 = vector.load %arg13[%185, %c0_46] : memref<16x32xf32, #tpu.memory_space<vmem>>, vector<2x32xf32>
    tpu.vector_store %arg13[%185, %c0_46], %184 {strides = array<i32>} : memref<16x32xf32, #tpu.memory_space<vmem>>, vector<2x32xf32>,
    %c7_i32 = arith.constant 7 : i32
    %c2_i32_47 = arith.constant 2 : i32
    %187 = arith.muli %c7_i32, %c2_i32_47 : i32
    %188 = arith.index_cast %187 : i32 to index
    %c0_48 = arith.constant 0 : index
    %189 = vector.load %arg12[%188, %c0_48] : memref<16x96xf32, #tpu.memory_space<vmem>>, vector<2x96xf32>
    %cst_49 = arith.constant dense<0.000000e+00> : vector<2x96xf32>
    %190 = tpu.matmul %184, %1, %cst_49 {dimension_numbers = #tpu.dot_dimension_numbers<[1], [0], [0], [1], [0, 0, 1, 1], [], []>} : vector<2x32xf32>, vector<32x96xf32>, vector<2x96xf32> -> vector<2x96xf32>
    %191 = vector.extract_strided_slice %189 {offsets = [0, 0], sizes = [2, 64], strides = [1, 1]} : vector<2x96xf32> to vector<2x64xf32>
    %192 = vector.extract_strided_slice %190 {offsets = [0, 0], sizes = [2, 64], strides = [1, 1]} : vector<2x96xf32> to vector<2x64xf32>
    %193 = arith.addf %191, %192 : vector<2x64xf32>
    %194 = arith.negf %193 : vector<2x64xf32>
    %195 = math.exp %194 : vector<2x64xf32>
    %cst_50 = arith.constant 1.000000e+00 : f32
    %196 = vector.broadcast %cst_50 : f32 to vector<2x64xf32>
    %197 = arith.addf %196, %195 : vector<2x64xf32>
    %198 = arith.divf %196, %197 : vector<2x64xf32>
    %199 = vector.extract_strided_slice %198 {offsets = [0, 0], sizes = [2, 32], strides = [1, 1]} : vector<2x64xf32> to vector<2x32xf32>
    %200 = vector.extract_strided_slice %198 {offsets = [0, 32], sizes = [2, 32], strides = [1, 1]} : vector<2x64xf32> to vector<2x32xf32>
    %201 = vector.extract_strided_slice %189 {offsets = [0, 64], sizes = [2, 32], strides = [1, 1]} : vector<2x96xf32> to vector<2x32xf32>
    %202 = vector.extract_strided_slice %190 {offsets = [0, 64], sizes = [2, 32], strides = [1, 1]} : vector<2x96xf32> to vector<2x32xf32>
    %203 = arith.addf %202, %5 : vector<2x32xf32>
    %204 = arith.mulf %199, %203 : vector<2x32xf32>
    %205 = arith.addf %201, %204 : vector<2x32xf32>
    %206 = math.tanh %205 : vector<2x32xf32>
    %207 = arith.subf %184, %206 : vector<2x32xf32>
    %208 = arith.mulf %200, %207 : vector<2x32xf32>
    %209 = arith.addf %206, %208 : vector<2x32xf32>
    %210 = arith.index_cast %187 : i32 to index
    %c0_51 = arith.constant 0 : index
    %211 = vector.load %arg13[%210, %c0_51] : memref<16x32xf32, #tpu.memory_space<vmem>>, vector<2x32xf32>
    tpu.vector_store %arg13[%210, %c0_51], %209 {strides = array<i32>} : memref<16x32xf32, #tpu.memory_space<vmem>>, vector<2x32xf32>,
    %c8_i32 = arith.constant 8 : i32
    %c0_52 = arith.constant 0 : index
    %c0_53 = arith.constant 0 : index
    %212 = vector.load %arg5[%c0_52, %c0_53] : memref<32x96xf32, #tpu.memory_space<vmem>>, vector<32x96xf32>
    %c0_54 = arith.constant 0 : index
    %c0_55 = arith.constant 0 : index
    %213 = vector.load %arg6[%c0_54, %c0_55] : memref<32x96xf32, #tpu.memory_space<vmem>>, vector<32x96xf32>
    %c0_56 = arith.constant 0 : index
    %c0_57 = arith.constant 0 : index
    %214 = vector.load %arg7[%c0_56, %c0_57] : memref<1x96xf32, #tpu.memory_space<vmem>>, vector<1x96xf32>
    %c0_58 = arith.constant 0 : index
    %c0_59 = arith.constant 0 : index
    %215 = vector.load %arg8[%c0_58, %c0_59] : memref<1x32xf32, #tpu.memory_space<vmem>>, vector<1x32xf32>
    %216 = vector.shape_cast %215 : vector<1x32xf32> to vector<1x32xf32>
    %217 = vector.broadcast %216 : vector<1x32xf32> to vector<2x32xf32>
    %c0_60 = arith.constant 0 : index
    %c0_61 = arith.constant 0 : index
    %218 = vector.load %arg13[%c0_60, %c0_61] : memref<16x32xf32, #tpu.memory_space<vmem>>, vector<16x32xf32>
    %cst_62 = arith.constant dense<0.000000e+00> : vector<16x96xf32>
    %219 = tpu.matmul %218, %212, %cst_62 {dimension_numbers = #tpu.dot_dimension_numbers<[1], [0], [0], [1], [0, 0, 1, 1], [], []>} : vector<16x32xf32>, vector<32x96xf32>, vector<16x96xf32> -> vector<16x96xf32>
    %220 = vector.broadcast %214 : vector<1x96xf32> to vector<16x96xf32>
    %221 = arith.addf %219, %220 : vector<16x96xf32>
    %c0_63 = arith.constant 0 : index
    %c0_64 = arith.constant 0 : index
    %222 = vector.load %arg12[%c0_63, %c0_64] : memref<16x96xf32, #tpu.memory_space<vmem>>, vector<16x96xf32>
    tpu.vector_store %arg12[%c0_63, %c0_64], %221 {strides = array<i32>} : memref<16x96xf32, #tpu.memory_space<vmem>>, vector<16x96xf32>,
    %cst_65 = arith.constant 0.000000e+00 : f32
    %223 = vector.broadcast %cst_65 : f32 to vector<2x32xf32>
    %c0_i32_66 = arith.constant 0 : i32
    %c2_i32_67 = arith.constant 2 : i32
    %224 = arith.muli %c0_i32_66, %c2_i32_67 : i32
    %225 = arith.index_cast %224 : i32 to index
    %c0_68 = arith.constant 0 : index
    %226 = vector.load %arg12[%225, %c0_68] : memref<16x96xf32, #tpu.memory_space<vmem>>, vector<2x96xf32>
    %cst_69 = arith.constant dense<0.000000e+00> : vector<2x96xf32>
    %227 = tpu.matmul %223, %213, %cst_69 {dimension_numbers = #tpu.dot_dimension_numbers<[1], [0], [0], [1], [0, 0, 1, 1], [], []>} : vector<2x32xf32>, vector<32x96xf32>, vector<2x96xf32> -> vector<2x96xf32>
    %228 = vector.extract_strided_slice %226 {offsets = [0, 0], sizes = [2, 64], strides = [1, 1]} : vector<2x96xf32> to vector<2x64xf32>
    %229 = vector.extract_strided_slice %227 {offsets = [0, 0], sizes = [2, 64], strides = [1, 1]} : vector<2x96xf32> to vector<2x64xf32>
    %230 = arith.addf %228, %229 : vector<2x64xf32>
    %231 = arith.negf %230 : vector<2x64xf32>
    %232 = math.exp %231 : vector<2x64xf32>
    %cst_70 = arith.constant 1.000000e+00 : f32
    %233 = vector.broadcast %cst_70 : f32 to vector<2x64xf32>
    %234 = arith.addf %233, %232 : vector<2x64xf32>
    %235 = arith.divf %233, %234 : vector<2x64xf32>
    %236 = vector.extract_strided_slice %235 {offsets = [0, 0], sizes = [2, 32], strides = [1, 1]} : vector<2x64xf32> to vector<2x32xf32>
    %237 = vector.extract_strided_slice %235 {offsets = [0, 32], sizes = [2, 32], strides = [1, 1]} : vector<2x64xf32> to vector<2x32xf32>
    %238 = vector.extract_strided_slice %226 {offsets = [0, 64], sizes = [2, 32], strides = [1, 1]} : vector<2x96xf32> to vector<2x32xf32>
    %239 = vector.extract_strided_slice %227 {offsets = [0, 64], sizes = [2, 32], strides = [1, 1]} : vector<2x96xf32> to vector<2x32xf32>
    %240 = arith.addf %239, %217 : vector<2x32xf32>
    %241 = arith.mulf %236, %240 : vector<2x32xf32>
    %242 = arith.addf %238, %241 : vector<2x32xf32>
    %243 = math.tanh %242 : vector<2x32xf32>
    %244 = arith.subf %223, %243 : vector<2x32xf32>
    %245 = arith.mulf %237, %244 : vector<2x32xf32>
    %246 = arith.addf %243, %245 : vector<2x32xf32>
    %c1_i32_71 = arith.constant 1 : i32
    %c2_i32_72 = arith.constant 2 : i32
    %247 = arith.muli %c1_i32_71, %c2_i32_72 : i32
    %248 = arith.index_cast %247 : i32 to index
    %c0_73 = arith.constant 0 : index
    %249 = vector.load %arg12[%248, %c0_73] : memref<16x96xf32, #tpu.memory_space<vmem>>, vector<2x96xf32>
    %cst_74 = arith.constant dense<0.000000e+00> : vector<2x96xf32>
    %250 = tpu.matmul %246, %213, %cst_74 {dimension_numbers = #tpu.dot_dimension_numbers<[1], [0], [0], [1], [0, 0, 1, 1], [], []>} : vector<2x32xf32>, vector<32x96xf32>, vector<2x96xf32> -> vector<2x96xf32>
    %251 = vector.extract_strided_slice %249 {offsets = [0, 0], sizes = [2, 64], strides = [1, 1]} : vector<2x96xf32> to vector<2x64xf32>
    %252 = vector.extract_strided_slice %250 {offsets = [0, 0], sizes = [2, 64], strides = [1, 1]} : vector<2x96xf32> to vector<2x64xf32>
    %253 = arith.addf %251, %252 : vector<2x64xf32>
    %254 = arith.negf %253 : vector<2x64xf32>
    %255 = math.exp %254 : vector<2x64xf32>
    %cst_75 = arith.constant 1.000000e+00 : f32
    %256 = vector.broadcast %cst_75 : f32 to vector<2x64xf32>
    %257 = arith.addf %256, %255 : vector<2x64xf32>
    %258 = arith.divf %256, %257 : vector<2x64xf32>
    %259 = vector.extract_strided_slice %258 {offsets = [0, 0], sizes = [2, 32], strides = [1, 1]} : vector<2x64xf32> to vector<2x32xf32>
    %260 = vector.extract_strided_slice %258 {offsets = [0, 32], sizes = [2, 32], strides = [1, 1]} : vector<2x64xf32> to vector<2x32xf32>
    %261 = vector.extract_strided_slice %249 {offsets = [0, 64], sizes = [2, 32], strides = [1, 1]} : vector<2x96xf32> to vector<2x32xf32>
    %262 = vector.extract_strided_slice %250 {offsets = [0, 64], sizes = [2, 32], strides = [1, 1]} : vector<2x96xf32> to vector<2x32xf32>
    %263 = arith.addf %262, %217 : vector<2x32xf32>
    %264 = arith.mulf %259, %263 : vector<2x32xf32>
    %265 = arith.addf %261, %264 : vector<2x32xf32>
    %266 = math.tanh %265 : vector<2x32xf32>
    %267 = arith.subf %246, %266 : vector<2x32xf32>
    %268 = arith.mulf %260, %267 : vector<2x32xf32>
    %269 = arith.addf %266, %268 : vector<2x32xf32>
    %c2_i32_76 = arith.constant 2 : i32
    %c2_i32_77 = arith.constant 2 : i32
    %270 = arith.muli %c2_i32_76, %c2_i32_77 : i32
    %271 = arith.index_cast %270 : i32 to index
    %c0_78 = arith.constant 0 : index
    %272 = vector.load %arg12[%271, %c0_78] : memref<16x96xf32, #tpu.memory_space<vmem>>, vector<2x96xf32>
    %cst_79 = arith.constant dense<0.000000e+00> : vector<2x96xf32>
    %273 = tpu.matmul %269, %213, %cst_79 {dimension_numbers = #tpu.dot_dimension_numbers<[1], [0], [0], [1], [0, 0, 1, 1], [], []>} : vector<2x32xf32>, vector<32x96xf32>, vector<2x96xf32> -> vector<2x96xf32>
    %274 = vector.extract_strided_slice %272 {offsets = [0, 0], sizes = [2, 64], strides = [1, 1]} : vector<2x96xf32> to vector<2x64xf32>
    %275 = vector.extract_strided_slice %273 {offsets = [0, 0], sizes = [2, 64], strides = [1, 1]} : vector<2x96xf32> to vector<2x64xf32>
    %276 = arith.addf %274, %275 : vector<2x64xf32>
    %277 = arith.negf %276 : vector<2x64xf32>
    %278 = math.exp %277 : vector<2x64xf32>
    %cst_80 = arith.constant 1.000000e+00 : f32
    %279 = vector.broadcast %cst_80 : f32 to vector<2x64xf32>
    %280 = arith.addf %279, %278 : vector<2x64xf32>
    %281 = arith.divf %279, %280 : vector<2x64xf32>
    %282 = vector.extract_strided_slice %281 {offsets = [0, 0], sizes = [2, 32], strides = [1, 1]} : vector<2x64xf32> to vector<2x32xf32>
    %283 = vector.extract_strided_slice %281 {offsets = [0, 32], sizes = [2, 32], strides = [1, 1]} : vector<2x64xf32> to vector<2x32xf32>
    %284 = vector.extract_strided_slice %272 {offsets = [0, 64], sizes = [2, 32], strides = [1, 1]} : vector<2x96xf32> to vector<2x32xf32>
    %285 = vector.extract_strided_slice %273 {offsets = [0, 64], sizes = [2, 32], strides = [1, 1]} : vector<2x96xf32> to vector<2x32xf32>
    %286 = arith.addf %285, %217 : vector<2x32xf32>
    %287 = arith.mulf %282, %286 : vector<2x32xf32>
    %288 = arith.addf %284, %287 : vector<2x32xf32>
    %289 = math.tanh %288 : vector<2x32xf32>
    %290 = arith.subf %269, %289 : vector<2x32xf32>
    %291 = arith.mulf %283, %290 : vector<2x32xf32>
    %292 = arith.addf %289, %291 : vector<2x32xf32>
    %c3_i32_81 = arith.constant 3 : i32
    %c2_i32_82 = arith.constant 2 : i32
    %293 = arith.muli %c3_i32_81, %c2_i32_82 : i32
    %294 = arith.index_cast %293 : i32 to index
    %c0_83 = arith.constant 0 : index
    %295 = vector.load %arg12[%294, %c0_83] : memref<16x96xf32, #tpu.memory_space<vmem>>, vector<2x96xf32>
    %cst_84 = arith.constant dense<0.000000e+00> : vector<2x96xf32>
    %296 = tpu.matmul %292, %213, %cst_84 {dimension_numbers = #tpu.dot_dimension_numbers<[1], [0], [0], [1], [0, 0, 1, 1], [], []>} : vector<2x32xf32>, vector<32x96xf32>, vector<2x96xf32> -> vector<2x96xf32>
    %297 = vector.extract_strided_slice %295 {offsets = [0, 0], sizes = [2, 64], strides = [1, 1]} : vector<2x96xf32> to vector<2x64xf32>
    %298 = vector.extract_strided_slice %296 {offsets = [0, 0], sizes = [2, 64], strides = [1, 1]} : vector<2x96xf32> to vector<2x64xf32>
    %299 = arith.addf %297, %298 : vector<2x64xf32>
    %300 = arith.negf %299 : vector<2x64xf32>
    %301 = math.exp %300 : vector<2x64xf32>
    %cst_85 = arith.constant 1.000000e+00 : f32
    %302 = vector.broadcast %cst_85 : f32 to vector<2x64xf32>
    %303 = arith.addf %302, %301 : vector<2x64xf32>
    %304 = arith.divf %302, %303 : vector<2x64xf32>
    %305 = vector.extract_strided_slice %304 {offsets = [0, 0], sizes = [2, 32], strides = [1, 1]} : vector<2x64xf32> to vector<2x32xf32>
    %306 = vector.extract_strided_slice %304 {offsets = [0, 32], sizes = [2, 32], strides = [1, 1]} : vector<2x64xf32> to vector<2x32xf32>
    %307 = vector.extract_strided_slice %295 {offsets = [0, 64], sizes = [2, 32], strides = [1, 1]} : vector<2x96xf32> to vector<2x32xf32>
    %308 = vector.extract_strided_slice %296 {offsets = [0, 64], sizes = [2, 32], strides = [1, 1]} : vector<2x96xf32> to vector<2x32xf32>
    %309 = arith.addf %308, %217 : vector<2x32xf32>
    %310 = arith.mulf %305, %309 : vector<2x32xf32>
    %311 = arith.addf %307, %310 : vector<2x32xf32>
    %312 = math.tanh %311 : vector<2x32xf32>
    %313 = arith.subf %292, %312 : vector<2x32xf32>
    %314 = arith.mulf %306, %313 : vector<2x32xf32>
    %315 = arith.addf %312, %314 : vector<2x32xf32>
    %c4_i32_86 = arith.constant 4 : i32
    %c2_i32_87 = arith.constant 2 : i32
    %316 = arith.muli %c4_i32_86, %c2_i32_87 : i32
    %317 = arith.index_cast %316 : i32 to index
    %c0_88 = arith.constant 0 : index
    %318 = vector.load %arg12[%317, %c0_88] : memref<16x96xf32, #tpu.memory_space<vmem>>, vector<2x96xf32>
    %cst_89 = arith.constant dense<0.000000e+00> : vector<2x96xf32>
    %319 = tpu.matmul %315, %213, %cst_89 {dimension_numbers = #tpu.dot_dimension_numbers<[1], [0], [0], [1], [0, 0, 1, 1], [], []>} : vector<2x32xf32>, vector<32x96xf32>, vector<2x96xf32> -> vector<2x96xf32>
    %320 = vector.extract_strided_slice %318 {offsets = [0, 0], sizes = [2, 64], strides = [1, 1]} : vector<2x96xf32> to vector<2x64xf32>
    %321 = vector.extract_strided_slice %319 {offsets = [0, 0], sizes = [2, 64], strides = [1, 1]} : vector<2x96xf32> to vector<2x64xf32>
    %322 = arith.addf %320, %321 : vector<2x64xf32>
    %323 = arith.negf %322 : vector<2x64xf32>
    %324 = math.exp %323 : vector<2x64xf32>
    %cst_90 = arith.constant 1.000000e+00 : f32
    %325 = vector.broadcast %cst_90 : f32 to vector<2x64xf32>
    %326 = arith.addf %325, %324 : vector<2x64xf32>
    %327 = arith.divf %325, %326 : vector<2x64xf32>
    %328 = vector.extract_strided_slice %327 {offsets = [0, 0], sizes = [2, 32], strides = [1, 1]} : vector<2x64xf32> to vector<2x32xf32>
    %329 = vector.extract_strided_slice %327 {offsets = [0, 32], sizes = [2, 32], strides = [1, 1]} : vector<2x64xf32> to vector<2x32xf32>
    %330 = vector.extract_strided_slice %318 {offsets = [0, 64], sizes = [2, 32], strides = [1, 1]} : vector<2x96xf32> to vector<2x32xf32>
    %331 = vector.extract_strided_slice %319 {offsets = [0, 64], sizes = [2, 32], strides = [1, 1]} : vector<2x96xf32> to vector<2x32xf32>
    %332 = arith.addf %331, %217 : vector<2x32xf32>
    %333 = arith.mulf %328, %332 : vector<2x32xf32>
    %334 = arith.addf %330, %333 : vector<2x32xf32>
    %335 = math.tanh %334 : vector<2x32xf32>
    %336 = arith.subf %315, %335 : vector<2x32xf32>
    %337 = arith.mulf %329, %336 : vector<2x32xf32>
    %338 = arith.addf %335, %337 : vector<2x32xf32>
    %c5_i32_91 = arith.constant 5 : i32
    %c2_i32_92 = arith.constant 2 : i32
    %339 = arith.muli %c5_i32_91, %c2_i32_92 : i32
    %340 = arith.index_cast %339 : i32 to index
    %c0_93 = arith.constant 0 : index
    %341 = vector.load %arg12[%340, %c0_93] : memref<16x96xf32, #tpu.memory_space<vmem>>, vector<2x96xf32>
    %cst_94 = arith.constant dense<0.000000e+00> : vector<2x96xf32>
    %342 = tpu.matmul %338, %213, %cst_94 {dimension_numbers = #tpu.dot_dimension_numbers<[1], [0], [0], [1], [0, 0, 1, 1], [], []>} : vector<2x32xf32>, vector<32x96xf32>, vector<2x96xf32> -> vector<2x96xf32>
    %343 = vector.extract_strided_slice %341 {offsets = [0, 0], sizes = [2, 64], strides = [1, 1]} : vector<2x96xf32> to vector<2x64xf32>
    %344 = vector.extract_strided_slice %342 {offsets = [0, 0], sizes = [2, 64], strides = [1, 1]} : vector<2x96xf32> to vector<2x64xf32>
    %345 = arith.addf %343, %344 : vector<2x64xf32>
    %346 = arith.negf %345 : vector<2x64xf32>
    %347 = math.exp %346 : vector<2x64xf32>
    %cst_95 = arith.constant 1.000000e+00 : f32
    %348 = vector.broadcast %cst_95 : f32 to vector<2x64xf32>
    %349 = arith.addf %348, %347 : vector<2x64xf32>
    %350 = arith.divf %348, %349 : vector<2x64xf32>
    %351 = vector.extract_strided_slice %350 {offsets = [0, 0], sizes = [2, 32], strides = [1, 1]} : vector<2x64xf32> to vector<2x32xf32>
    %352 = vector.extract_strided_slice %350 {offsets = [0, 32], sizes = [2, 32], strides = [1, 1]} : vector<2x64xf32> to vector<2x32xf32>
    %353 = vector.extract_strided_slice %341 {offsets = [0, 64], sizes = [2, 32], strides = [1, 1]} : vector<2x96xf32> to vector<2x32xf32>
    %354 = vector.extract_strided_slice %342 {offsets = [0, 64], sizes = [2, 32], strides = [1, 1]} : vector<2x96xf32> to vector<2x32xf32>
    %355 = arith.addf %354, %217 : vector<2x32xf32>
    %356 = arith.mulf %351, %355 : vector<2x32xf32>
    %357 = arith.addf %353, %356 : vector<2x32xf32>
    %358 = math.tanh %357 : vector<2x32xf32>
    %359 = arith.subf %338, %358 : vector<2x32xf32>
    %360 = arith.mulf %352, %359 : vector<2x32xf32>
    %361 = arith.addf %358, %360 : vector<2x32xf32>
    %c6_i32_96 = arith.constant 6 : i32
    %c2_i32_97 = arith.constant 2 : i32
    %362 = arith.muli %c6_i32_96, %c2_i32_97 : i32
    %363 = arith.index_cast %362 : i32 to index
    %c0_98 = arith.constant 0 : index
    %364 = vector.load %arg12[%363, %c0_98] : memref<16x96xf32, #tpu.memory_space<vmem>>, vector<2x96xf32>
    %cst_99 = arith.constant dense<0.000000e+00> : vector<2x96xf32>
    %365 = tpu.matmul %361, %213, %cst_99 {dimension_numbers = #tpu.dot_dimension_numbers<[1], [0], [0], [1], [0, 0, 1, 1], [], []>} : vector<2x32xf32>, vector<32x96xf32>, vector<2x96xf32> -> vector<2x96xf32>
    %366 = vector.extract_strided_slice %364 {offsets = [0, 0], sizes = [2, 64], strides = [1, 1]} : vector<2x96xf32> to vector<2x64xf32>
    %367 = vector.extract_strided_slice %365 {offsets = [0, 0], sizes = [2, 64], strides = [1, 1]} : vector<2x96xf32> to vector<2x64xf32>
    %368 = arith.addf %366, %367 : vector<2x64xf32>
    %369 = arith.negf %368 : vector<2x64xf32>
    %370 = math.exp %369 : vector<2x64xf32>
    %cst_100 = arith.constant 1.000000e+00 : f32
    %371 = vector.broadcast %cst_100 : f32 to vector<2x64xf32>
    %372 = arith.addf %371, %370 : vector<2x64xf32>
    %373 = arith.divf %371, %372 : vector<2x64xf32>
    %374 = vector.extract_strided_slice %373 {offsets = [0, 0], sizes = [2, 32], strides = [1, 1]} : vector<2x64xf32> to vector<2x32xf32>
    %375 = vector.extract_strided_slice %373 {offsets = [0, 32], sizes = [2, 32], strides = [1, 1]} : vector<2x64xf32> to vector<2x32xf32>
    %376 = vector.extract_strided_slice %364 {offsets = [0, 64], sizes = [2, 32], strides = [1, 1]} : vector<2x96xf32> to vector<2x32xf32>
    %377 = vector.extract_strided_slice %365 {offsets = [0, 64], sizes = [2, 32], strides = [1, 1]} : vector<2x96xf32> to vector<2x32xf32>
    %378 = arith.addf %377, %217 : vector<2x32xf32>
    %379 = arith.mulf %374, %378 : vector<2x32xf32>
    %380 = arith.addf %376, %379 : vector<2x32xf32>
    %381 = math.tanh %380 : vector<2x32xf32>
    %382 = arith.subf %361, %381 : vector<2x32xf32>
    %383 = arith.mulf %375, %382 : vector<2x32xf32>
    %384 = arith.addf %381, %383 : vector<2x32xf32>
    %c7_i32_101 = arith.constant 7 : i32
    %c2_i32_102 = arith.constant 2 : i32
    %385 = arith.muli %c7_i32_101, %c2_i32_102 : i32
    %386 = arith.index_cast %385 : i32 to index
    %c0_103 = arith.constant 0 : index
    %387 = vector.load %arg12[%386, %c0_103] : memref<16x96xf32, #tpu.memory_space<vmem>>, vector<2x96xf32>
    %cst_104 = arith.constant dense<0.000000e+00> : vector<2x96xf32>
    %388 = tpu.matmul %384, %213, %cst_104 {dimension_numbers = #tpu.dot_dimension_numbers<[1], [0], [0], [1], [0, 0, 1, 1], [], []>} : vector<2x32xf32>, vector<32x96xf32>, vector<2x96xf32> -> vector<2x96xf32>
    %389 = vector.extract_strided_slice %387 {offsets = [0, 0], sizes = [2, 64], strides = [1, 1]} : vector<2x96xf32> to vector<2x64xf32>
    %390 = vector.extract_strided_slice %388 {offsets = [0, 0], sizes = [2, 64], strides = [1, 1]} : vector<2x96xf32> to vector<2x64xf32>
    %391 = arith.addf %389, %390 : vector<2x64xf32>
    %392 = arith.negf %391 : vector<2x64xf32>
    %393 = math.exp %392 : vector<2x64xf32>
    %cst_105 = arith.constant 1.000000e+00 : f32
    %394 = vector.broadcast %cst_105 : f32 to vector<2x64xf32>
    %395 = arith.addf %394, %393 : vector<2x64xf32>
    %396 = arith.divf %394, %395 : vector<2x64xf32>
    %397 = vector.extract_strided_slice %396 {offsets = [0, 0], sizes = [2, 32], strides = [1, 1]} : vector<2x64xf32> to vector<2x32xf32>
    %398 = vector.extract_strided_slice %396 {offsets = [0, 32], sizes = [2, 32], strides = [1, 1]} : vector<2x64xf32> to vector<2x32xf32>
    %399 = vector.extract_strided_slice %387 {offsets = [0, 64], sizes = [2, 32], strides = [1, 1]} : vector<2x96xf32> to vector<2x32xf32>
    %400 = vector.extract_strided_slice %388 {offsets = [0, 64], sizes = [2, 32], strides = [1, 1]} : vector<2x96xf32> to vector<2x32xf32>
    %401 = arith.addf %400, %217 : vector<2x32xf32>
    %402 = arith.mulf %397, %401 : vector<2x32xf32>
    %403 = arith.addf %399, %402 : vector<2x32xf32>
    %404 = math.tanh %403 : vector<2x32xf32>
    %405 = arith.subf %384, %404 : vector<2x32xf32>
    %406 = arith.mulf %398, %405 : vector<2x32xf32>
    %407 = arith.addf %404, %406 : vector<2x32xf32>
    %c8_i32_106 = arith.constant 8 : i32
    %c0_107 = arith.constant 0 : index
    %c0_108 = arith.constant 0 : index
    %408 = vector.load %arg9[%c0_107, %c0_108] : memref<32x8xf32, #tpu.memory_space<vmem>>, vector<32x8xf32>
    %cst_109 = arith.constant dense<0.000000e+00> : vector<2x8xf32>
    %409 = tpu.matmul %407, %408, %cst_109 {dimension_numbers = #tpu.dot_dimension_numbers<[1], [0], [0], [1], [0, 0, 1, 1], [], []>} : vector<2x32xf32>, vector<32x8xf32>, vector<2x8xf32> -> vector<2x8xf32>
    %c0_110 = arith.constant 0 : index
    %c0_111 = arith.constant 0 : index
    %410 = vector.load %arg10[%c0_110, %c0_111] : memref<1x8xf32, #tpu.memory_space<vmem>>, vector<1x8xf32>
    %411 = vector.broadcast %410 : vector<1x8xf32> to vector<2x8xf32>
    %412 = arith.addf %409, %411 : vector<2x8xf32>
    %c0_112 = arith.constant 0 : index
    %c0_113 = arith.constant 0 : index
    %413 = vector.load %arg11[%c0_112, %c0_113] : memref<2x8xf32, #tpu.memory_space<vmem>>, vector<2x8xf32>
    tpu.vector_store %arg11[%c0_112, %c0_113], %412 {strides = array<i32>} : memref<2x8xf32, #tpu.memory_space<vmem>>, vector<2x8xf32>,
    return
  }
}

</mosaic_0001>

<bundles_post_ra>
// kernel: _gru_v0_pallas.1
= control target key start
LH: loop header
LB: loop body
LE: loop exit
PB: predicated region body
PF: predicated region fallthrough
CT: control target
= control target key end

     0   :  { %16 = vsyncpa [#allocation6], 0  ;;  %s3098_s0 = inlined_call_operand.vmem [shape: f32[16,16], index: 0, kind: input, shape index: {}]   ;;  %s3099_s1 = inlined_call_operand.hbm [shape: f32[16,96], index: 1, kind: input, shape index: {}]   ;;  %s3100_s2 = inlined_call_operand.vmem [shape: f32[32,96], index: 2, kind: input, shape index: {}]   ;;  %s3101_s3 = inlined_call_operand.vmem [shape: f32[1,96], index: 3, kind: input, shape index: {}]   ;;  %s3102_s4 = inlined_call_operand.vmem [shape: f32[1,32], index: 4, kind: input, shape index: {}]   ;;  %s3103_s5 = inlined_call_operand.vmem [shape: f32[32,96], index: 5, kind: input, shape index: {}]   ;;  %s3104_s6 = inlined_call_operand.vmem [shape: f32[32,96], index: 6, kind: input, shape index: {}]   ;;  %s3105_s7 = inlined_call_operand.vmem [shape: f32[1,96], index: 7, kind: input, shape index: {}]   ;;  %s3106_s8 = inlined_call_operand.vmem [shape: f32[1,32], index: 8, kind: input, shape index: {}]   ;;  %s3107_s9 = inlined_call_operand.vmem [shape: f32[32,8], index: 9, kind: input, shape index: {}]   ;;  %s3108_s10 = inlined_call_operand.vmem [shape: f32[1,8], index: 10, kind: input, shape index: {}]   ;;  %s3109_s11 = inlined_call_operand.hbm [shape: f32[2,8], index: 11, kind: output, shape index: {}]  }
   0x1   :  { %17 = vsyncpa [#allocation7], 0  ;;  %s2692_s17 = smov [#allocation5]   ;;  %s2644_s21 = scalar_lea.hbm %s3099_s1, 256 }
   0x2   :  { %s25_s18 = sshll.u32 %s2692_s17, 4  ;;  %p2645_p0 = scmp.ne.s32.totalorder %s3099_s1, %s2644_s21  ;;  %s26_s18 = int_to_ptr.vmem [resolvable:$true] %s25_s18 }
   0x3   :  { %p2648_p1 = scmp.lt.u32.totalorder %s2644_s21, %s3099_s1 }
   0x5   :  { %p2650_p2 = pnand %p2648_p1, %p2645_p0 }
   0x7   :  { %2653 = shalt.err (!%p2650_p2)
}
   0x8   :  { %s2654_s26 = scalar_lea.vmem %s26_s18, 256  ;;  %p2659_p4 = scmp.lt.s32.totalorder %s26_s18, %s26_s18 }
   0x9   :  { %p2655_p3 = scmp.ne.s32.totalorder %s26_s18, %s2654_s26  ;;  %p2660_p5 = scmp.lt.s32.totalorder %s2654_s26, %s2654_s26 }
   0xb   :  { %p2661_p6 = por %p2660_p5, %p2659_p4 }
   0xd   :  { %p2662_p7 = pnand %p2661_p6, %p2655_p3 }
   0xf   :  { %2665 = shalt.err (!%p2662_p7)
}
  0x10   :  { %s2693_s27 = smov 128   ;;  %s2694_s28 = smov 8  }
  0x11   :  { %31 = dma.hbm_to_vmem [thread:$0]  %s3099_s1, 256, %s26_s18, [#allocation6], %s2693_s27, %s2693_s27, %s2694_s28  }
  0x12   :  { %2688 = dma.done.wait [#allocation6], 256  }
  0x13   :  { %2689 = vsyncadd [#allocation6], 4294967040  ;;  %v2695_v0 = vmov 0.0|0.0   ;;  %vm2696_vm0 = vmmov 0   ;;  %v2697_v1 = vmov 0.0   ;;  %vm74_vm1 = vcmask 130048  }
  0x14   :  { %2428 = vmatprep.subr.bf16.mxu1 %v2695_v0  ;;  %2234 = vmatprep.mubr.msk.f32.mxu1 %vm2696_vm0, %v2697_v1  ;;  %v53_v2 = vld [vmem:[#allocation5] sm:$0xff]  ;;  %v54_v3 = vld [vmem:[#allocation5 + $0x8] sm:$0xff]  ;;  %v57_v9 = vld [vmem:[%s3100_s2 + $0x10] sm:$0xff]  ;;  %s2698_s23 = smov 64   ;;  %vm156_vm2 = vcmask 785408   ;;  %vm271_vm3 = vcmask 254976  }
  0x15   :  { %v55_v4 = vld [vmem:[%s3100_s2] sm:$0xff]  ;;  %v2424_v5 = vpack.c.bf16 %v54_v3, %v53_v2  ;;  %v56_v6 = vld [vmem:[%s3100_s2 + $0x8] sm:$0xff]  ;;  %v58_v10 = vld [vmem:[%s3100_s2 + $0x18] sm:$0xff]  ;;  %vm160_vm4 = vcmask 261120   ;;  %vm2067_vm5 = vcmask 58368  }
  0x16   :  { %v66_v7 = vld [vmem:[%s3098_s0] sm:$0xff]  ;;  %v2786_v8 = vpack.c.bf16 %v56_v6, %v55_v4  ;;  %v67_v12 = vld [vmem:[%s3098_s0 + $0x8] sm:$0xff]  ;;  %v2803_v13 = vpack.c.bf16 %v58_v10, %v57_v9 }
  0x17   :  { %2223 = vmatprep.mubr.msk.f32.mxu0 %vm74_vm1, %v66_v7  ;;  %v2084_v11 = vld [vmem:[%s3102_s4] ss:$0 sm:$0xff]  ;;  %2425 = vmatprep.subr.bf16.mxu0 %v2424_v5  ;;  %s2700_s4 = smov 32  }
  0x18   :  { %241 = vrot.lane.b32.xlu0 %v2084_v11, %s2698_s23  ;;  %2430 = vmatpush3.bf16.msra.mxu1 %v2786_v8  ;;  %v2085_v14 = vld [vmem:[%s3101_s3] ss:$0 sm:$0xff]  ;;  %s2699_s3 = smov 96  }
  0x19   :  { %2427 = vmatpush3.bf16.msra.mxu0 %v2424_v5  ;;  %2431 = vmatprep.subr.bf16.mxu1 %v2695_v0 }
  0x1a   :  { %2434 = vmatprep.subr.bf16.mxu0 %v2695_v0 }
  0x1c   :  { %2224 = vmatmul.mubr.msk.f32.vlgmr.msra.gmra.mrb[0].mxu0 %vm74_vm1, %v67_v12  ;;  %2433 = vmatpush3.bf16.msra.mxu1 %v2803_v13 }
  0x1d   :  { %2436 = vmatpush3.bf16.msra.mxu0 %v2786_v8  ;;  %2245 = vmatprep.mubr.msk.f32.mxu0 %vm2696_vm0, %v2697_v1 }
  0x1e   :  { %2437 = vmatprep.subr.bf16.mxu0 %v2695_v0  ;;  %2440 = vmatprep.subr.bf16.mxu1 %v2695_v0 }
  0x1f   :  { %2235 = vmatmul.mubr.f32.vlgmr.msra.gmra.mrb[0].mxu1 %v2697_v1 }
  0x20   :  { %2442 = vmatpush3.bf16.msra.mxu1 %v2786_v8  ;;  %2256 = vmatprep.mubr.msk.f32.mxu1 %vm2696_vm0, %v2697_v1 }
  0x21   :  { %2439 = vmatpush3.bf16.msra.mxu0 %v2803_v13  ;;  %2443 = vmatprep.subr.bf16.mxu1 %v2695_v0 }
  0x22   :  { %2446 = vmatprep.subr.bf16.mxu0 %v2695_v0 }
  0x24   :  { %2445 = vmatpush3.bf16.msra.mxu1 %v2803_v13 }
  0x25   :  { %2452 = vmatprep.subr.bf16.mxu1 %v2695_v0 }
  0x8a   :  { %v2826_v19 = vpop.permute.xlu0 %241 }
  0xef   :  { %v2225_v15 = vpop.f32.mrb[0].mxu0 }
  0xf0   :  { %v153_v16 = vadd.f32 %v2225_v15, %v2085_v14  ;;  %v147_v17 = vpop.f32.mrb[1].mxu0 }
  0xf1   :  { %v148_v18 = vadd.f32 %v2085_v14, %v147_v17 }
  0xf2   :  { %158 = vst.msk [vmem:[#allocation2 + $0x8] sm:$0xff] %vm156_vm2, %v153_v16  ;;  %v230_v20 = vpop.f32.mrb[0].mxu1 }
  0xf3   :  { %157 = vst.msk [vmem:[#allocation2] sm:$0xff] %vm156_vm2, %v148_v18  ;;  %v244_v21 = vadd.f32 %v2826_v19, %v230_v20  ;;  %v2236_v22 = vpop.f32.mrb[1].mxu1 }
  0xf5   :  { %246 = vrot.lane.b32.xlu0 %v244_v21, %s2698_s23 }
  0xfa   :  { %v159_v23 = vld [vmem:[#allocation2] sm:$0x3]  ;;  %v273_v43 = vld [vmem:[#allocation2 + $0x2] sm:$0x3]  ;;  %v381_v63 = vld [vmem:[#allocation2 + $0x4] sm:$0x3] }
  0xfb   :  { %v234_v24 = vadd.f32 %v230_v20, %v159_v23 }
  0xfd   :  { %v2088_v25 = vmul.f32 -1.442695, %v234_v24  ;;  %v489_v24 = vld [vmem:[#allocation2 + $0x6] sm:$0x3] }
  0xff   :  { %2548 = vpow2.f32 %v2088_v25 }
 0x109   :  { %v2549_v26 = vpop.eup %2548 }
 0x10a   :  { %v238_v27 = vadd.f32 1.0, %v2549_v26 }
 0x10c   :  { %2550 = vrcp.f32 %v238_v27 }
 0x116   :  { %v2551_v28 = vpop.eup %2550 }
 0x167   :  { %v247_v29 = vpop.permute.xlu0 %246 }
 0x168   :  { %v249_v30 = vmul.f32 %v2551_v28, %v247_v29 }
 0x16a   :  { %251 = vrot.lane.b32.xlu1 %v249_v30, %s2698_s23 }
 0x1dc   :  { %v252_v31 = vpop.permute.xlu1 %251 }
 0x1dd   :  { %v254_v32 = vadd.f32 %v252_v31, %v159_v23 }
 0x1df   :  { %2552 = vtanh.f32 %v254_v32 }
 0x1e9   :  { %v2553_v33 = vpop.eup %2552 }
 0x1ea   :  { %v256_v34 = vsub.f32 0.0, %v2553_v33 }
 0x1ec   :  { %258 = vrot.lane.b32.xlu1 %v256_v34, %s2699_s3 }
 0x25e   :  { %v259_v35 = vpop.permute.xlu1 %258 }
 0x25f   :  { %v261_v36 = vmul.f32 %v2551_v28, %v259_v35 }
 0x261   :  { %263 = vrot.lane.b32.xlu0 %v261_v36, %s2700_s4 }
 0x2d3   :  { %v264_v37 = vpop.permute.xlu0 %263 }
 0x2d4   :  { %v266_v38 = vadd.f32 %v2553_v33, %v264_v37 }
 0x2d6   :  { %268 = vrot.lane.b32.xlu1 %v266_v38, %s2698_s23 }
 0x348   :  { %v269_v39 = vpop.permute.xlu1 %268 }
 0x349   :  { %272 = vst.msk [vmem:[#allocation3] sm:$0x3] %vm271_vm3, %v269_v39  ;;  %2246 = vmatmul.mubr.msk.f32.vlgmr.msra.gmra.mrb[2].mxu0 %vm160_vm4, %v269_v39 }
 0x34a   :  { %2448 = vmatpush3.bf16.msra.mxu0 %v2786_v8  ;;  %2267 = vmatprep.mubr.msk.f32.mxu0 %vm2696_vm0, %v2697_v1 }
 0x34b   :  { %2449 = vmatprep.subr.bf16.mxu0 %v2695_v0 }
 0x34e   :  { %2451 = vmatpush3.bf16.msra.mxu0 %v2803_v13 }
 0x34f   :  { %2458 = vmatprep.subr.bf16.mxu0 %v2695_v0 }
 0x41c   :  { %v342_v40 = vpop.f32.mrb[2].mxu0 }
 0x41d   :  { %v353_v41 = vadd.f32 %v342_v40, %v2826_v19  ;;  %v2247_v42 = vpop.f32.mrb[3].mxu0  ;;  %v346_v44 = vadd.f32 %v342_v40, %v273_v43 }
 0x41f   :  { %355 = vrot.lane.b32.xlu0 %v353_v41, %s2698_s23  ;;  %v2090_v45 = vmul.f32 -1.442695, %v346_v44  ;;  %v597_v44 = vld [vmem:[#allocation2 + $0x8] sm:$0x3] }
 0x421   :  { %2554 = vpow2.f32 %v2090_v45 }
 0x42b   :  { %v2555_v46 = vpop.eup %2554 }
 0x42c   :  { %v350_v47 = vadd.f32 1.0, %v2555_v46 }
 0x42e   :  { %2556 = vrcp.f32 %v350_v47 }
 0x438   :  { %v2557_v48 = vpop.eup %2556 }
 0x491   :  { %v356_v49 = vpop.permute.xlu0 %355 }
 0x492   :  { %v358_v50 = vmul.f32 %v2557_v48, %v356_v49 }
 0x494   :  { %360 = vrot.lane.b32.xlu1 %v358_v50, %s2698_s23 }
 0x506   :  { %v361_v51 = vpop.permute.xlu1 %360 }
 0x507   :  { %v363_v52 = vadd.f32 %v361_v51, %v273_v43 }
 0x509   :  { %2558 = vtanh.f32 %v363_v52 }
 0x513   :  { %v2559_v53 = vpop.eup %2558 }
 0x514   :  { %v365_v54 = vsub.f32 %v266_v38, %v2559_v53 }
 0x516   :  { %367 = vrot.lane.b32.xlu0 %v365_v54, %s2699_s3 }
 0x588   :  { %v368_v55 = vpop.permute.xlu0 %367 }
 0x589   :  { %v370_v56 = vmul.f32 %v2557_v48, %v368_v55 }
 0x58b   :  { %372 = vrot.lane.b32.xlu1 %v370_v56, %s2700_s4 }
 0x5fd   :  { %v373_v57 = vpop.permute.xlu1 %372 }
 0x5fe   :  { %v375_v58 = vadd.f32 %v2559_v53, %v373_v57 }
 0x600   :  { %377 = vrot.lane.b32.xlu0 %v375_v58, %s2698_s23 }
 0x672   :  { %v378_v59 = vpop.permute.xlu0 %377 }
 0x673   :  { %380 = vst.msk [vmem:[#allocation3 + $0x2] sm:$0x3] %vm271_vm3, %v378_v59  ;;  %2257 = vmatmul.mubr.msk.f32.vlgmr.msra.gmra.mrb[2].mxu1 %vm160_vm4, %v378_v59 }
 0x674   :  { %2454 = vmatpush3.bf16.msra.mxu1 %v2786_v8  ;;  %2278 = vmatprep.mubr.msk.f32.mxu1 %vm2696_vm0, %v2697_v1 }
 0x675   :  { %2455 = vmatprep.subr.bf16.mxu1 %v2695_v0 }
 0x678   :  { %2457 = vmatpush3.bf16.msra.mxu1 %v2803_v13 }
 0x679   :  { %2464 = vmatprep.subr.bf16.mxu1 %v2695_v0 }
 0x746   :  { %v450_v60 = vpop.f32.mrb[2].mxu1 }
 0x747   :  { %v461_v61 = vadd.f32 %v450_v60, %v2826_v19  ;;  %v2258_v62 = vpop.f32.mrb[3].mxu1  ;;  %v454_v2 = vadd.f32 %v450_v60, %v381_v63 }
 0x749   :  { %463 = vrot.lane.b32.xlu1 %v461_v61, %s2698_s23  ;;  %v2092_v3 = vmul.f32 -1.442695, %v454_v2  ;;  %v705_v2 = vld [vmem:[#allocation2 + $0xa] sm:$0x3] }
 0x74b   :  { %2560 = vpow2.f32 %v2092_v3 }
 0x755   :  { %v2561_v4 = vpop.eup %2560 }
 0x756   :  { %v458_v5 = vadd.f32 1.0, %v2561_v4 }
 0x758   :  { %2562 = vrcp.f32 %v458_v5 }
 0x762   :  { %v2563_v6 = vpop.eup %2562 }
 0x7bb   :  { %v464_v7 = vpop.permute.xlu1 %463 }
 0x7bc   :  { %v466_v9 = vmul.f32 %v2563_v6, %v464_v7 }
 0x7be   :  { %468 = vrot.lane.b32.xlu0 %v466_v9, %s2698_s23 }
 0x830   :  { %v469_v10 = vpop.permute.xlu0 %468 }
 0x831   :  { %v471_v11 = vadd.f32 %v469_v10, %v381_v63 }
 0x833   :  { %2564 = vtanh.f32 %v471_v11 }
 0x83d   :  { %v2565_v12 = vpop.eup %2564 }
 0x83e   :  { %v473_v14 = vsub.f32 %v375_v58, %v2565_v12 }
 0x840   :  { %475 = vrot.lane.b32.xlu1 %v473_v14, %s2699_s3 }
 0x8b2   :  { %v476_v15 = vpop.permute.xlu1 %475 }
 0x8b3   :  { %v478_v16 = vmul.f32 %v2563_v6, %v476_v15 }
 0x8b5   :  { %480 = vrot.lane.b32.xlu0 %v478_v16, %s2700_s4 }
 0x927   :  { %v481_v17 = vpop.permute.xlu0 %480 }
 0x928   :  { %v483_v18 = vadd.f32 %v2565_v12, %v481_v17 }
 0x92a   :  { %485 = vrot.lane.b32.xlu1 %v483_v18, %s2698_s23 }
 0x99c   :  { %v486_v20 = vpop.permute.xlu1 %485 }
 0x99d   :  { %488 = vst.msk [vmem:[#allocation3 + $0x4] sm:$0x3] %vm271_vm3, %v486_v20  ;;  %2268 = vmatmul.mubr.msk.f32.vlgmr.msra.gmra.mrb[4].mxu0 %vm160_vm4, %v486_v20 }
 0x99e   :  { %2460 = vmatpush3.bf16.msra.mxu0 %v2786_v8  ;;  %2289 = vmatprep.mubr.msk.f32.mxu0 %vm2696_vm0, %v2697_v1 }
 0x99f   :  { %2461 = vmatprep.subr.bf16.mxu0 %v2695_v0 }
 0x9a2   :  { %2463 = vmatpush3.bf16.msra.mxu0 %v2803_v13 }
 0x9a3   :  { %2470 = vmatprep.subr.bf16.mxu0 %v2695_v0 }
 0xa70   :  { %v558_v21 = vpop.f32.mrb[4].mxu0 }
 0xa71   :  { %v569_v22 = vadd.f32 %v558_v21, %v2826_v19  ;;  %v2269_v23 = vpop.f32.mrb[5].mxu0  ;;  %v562_v25 = vadd.f32 %v558_v21, %v489_v24 }
 0xa73   :  { %571 = vrot.lane.b32.xlu0 %v569_v22, %s2698_s23  ;;  %v2094_v26 = vmul.f32 -1.442695, %v562_v25 }
 0xa75   :  { %2566 = vpow2.f32 %v2094_v26 }
 0xa7f   :  { %v2567_v27 = vpop.eup %2566 }
 0xa80   :  { %v566_v28 = vadd.f32 1.0, %v2567_v27 }
 0xa82   :  { %2568 = vrcp.f32 %v566_v28 }
 0xa8c   :  { %v2569_v29 = vpop.eup %2568 }
 0xae5   :  { %v572_v30 = vpop.permute.xlu0 %571 }
 0xae6   :  { %v574_v31 = vmul.f32 %v2569_v29, %v572_v30 }
 0xae8   :  { %576 = vrot.lane.b32.xlu1 %v574_v31, %s2698_s23 }
 0xb5a   :  { %v577_v32 = vpop.permute.xlu1 %576 }
 0xb5b   :  { %v579_v33 = vadd.f32 %v577_v32, %v489_v24  ;;  %v813_v24 = vld [vmem:[#allocation2 + $0xc] sm:$0x3] }
 0xb5d   :  { %2570 = vtanh.f32 %v579_v33 }
 0xb67   :  { %v2571_v34 = vpop.eup %2570 }
 0xb68   :  { %v581_v35 = vsub.f32 %v483_v18, %v2571_v34 }
 0xb6a   :  { %583 = vrot.lane.b32.xlu0 %v581_v35, %s2699_s3 }
 0xbdc   :  { %v584_v36 = vpop.permute.xlu0 %583 }
 0xbdd   :  { %v586_v37 = vmul.f32 %v2569_v29, %v584_v36 }
 0xbdf   :  { %588 = vrot.lane.b32.xlu1 %v586_v37, %s2700_s4 }
 0xc51   :  { %v589_v38 = vpop.permute.xlu1 %588 }
 0xc52   :  { %v591_v39 = vadd.f32 %v2571_v34, %v589_v38 }
 0xc54   :  { %593 = vrot.lane.b32.xlu0 %v591_v39, %s2698_s23 }
 0xcc6   :  { %v594_v40 = vpop.permute.xlu0 %593 }
 0xcc7   :  { %596 = vst.msk [vmem:[#allocation3 + $0x6] sm:$0x3] %vm271_vm3, %v594_v40  ;;  %2279 = vmatmul.mubr.msk.f32.vlgmr.msra.gmra.mrb[4].mxu1 %vm160_vm4, %v594_v40 }
 0xcc8   :  { %2466 = vmatpush3.bf16.msra.mxu1 %v2786_v8  ;;  %2300 = vmatprep.mubr.msk.f32.mxu1 %vm2696_vm0, %v2697_v1 }
 0xcc9   :  { %2467 = vmatprep.subr.bf16.mxu1 %v2695_v0 }
 0xccc   :  { %2469 = vmatpush3.bf16.msra.mxu1 %v2803_v13 }
 0xcce   :  { %v1044_v20 = vld [vmem:[#allocation3] sm:$0xff] }
 0xd9a   :  { %v666_v41 = vpop.f32.mrb[4].mxu1 }
 0xd9b   :  { %v677_v42 = vadd.f32 %v666_v41, %v2826_v19  ;;  %v2280_v43 = vpop.f32.mrb[5].mxu1  ;;  %v670_v45 = vadd.f32 %v666_v41, %v597_v44 }
 0xd9d   :  { %679 = vrot.lane.b32.xlu1 %v677_v42, %s2698_s23  ;;  %v2096_v46 = vmul.f32 -1.442695, %v670_v45 }
 0xd9f   :  { %2572 = vpow2.f32 %v2096_v46 }
 0xda9   :  { %v2573_v47 = vpop.eup %2572 }
 0xdaa   :  { %v674_v48 = vadd.f32 1.0, %v2573_v47 }
 0xdac   :  { %2574 = vrcp.f32 %v674_v48 }
 0xdb6   :  { %v2575_v49 = vpop.eup %2574 }
 0xe0f   :  { %v680_v50 = vpop.permute.xlu1 %679 }
 0xe10   :  { %v682_v51 = vmul.f32 %v2575_v49, %v680_v50 }
 0xe12   :  { %684 = vrot.lane.b32.xlu0 %v682_v51, %s2698_s23 }
 0xe84   :  { %v685_v52 = vpop.permute.xlu0 %684 }
 0xe85   :  { %v687_v53 = vadd.f32 %v685_v52, %v597_v44  ;;  %v921_v44 = vld [vmem:[#allocation2 + $0xe] sm:$0x3] }
 0xe87   :  { %2576 = vtanh.f32 %v687_v53 }
 0xe91   :  { %v2577_v54 = vpop.eup %2576 }
 0xe92   :  { %v689_v55 = vsub.f32 %v591_v39, %v2577_v54 }
 0xe94   :  { %691 = vrot.lane.b32.xlu1 %v689_v55, %s2699_s3  ;;  %v1033_v55 = vld [vmem:[%s3104_s6] sm:$0xff] }
 0xf06   :  { %v692_v56 = vpop.permute.xlu1 %691 }
 0xf07   :  { %v694_v57 = vmul.f32 %v2575_v49, %v692_v56  ;;  %v1034_v56 = vld [vmem:[%s3104_s6 + $0x8] sm:$0xff] }
 0xf09   :  { %696 = vrot.lane.b32.xlu0 %v694_v57, %s2700_s4  ;;  %v1035_v57 = vld [vmem:[%s3104_s6 + $0x10] sm:$0xff] }
 0xf7b   :  { %v697_v58 = vpop.permute.xlu0 %696 }
 0xf7c   :  { %v699_v59 = vadd.f32 %v2577_v54, %v697_v58  ;;  %v2931_v58 = vpack.c.bf16 %v1034_v56, %v1033_v55 }
 0xf7e   :  { %701 = vrot.lane.b32.xlu1 %v699_v59, %s2698_s23 }
 0xff0   :  { %v702_v60 = vpop.permute.xlu1 %701 }
 0xff1   :  { %704 = vst.msk [vmem:[#allocation3 + $0x8] sm:$0x3] %vm271_vm3, %v702_v60  ;;  %2290 = vmatmul.mubr.msk.f32.vlgmr.msra.gmra.mrb[6].mxu0 %vm160_vm4, %v702_v60 }
 0xff2   :  { %2472 = vmatpush3.bf16.msra.mxu0 %v2786_v8  ;;  %2311 = vmatprep.mubr.msk.f32.mxu0 %vm2696_vm0, %v2697_v1 }
 0xff3   :  { %2473 = vmatprep.subr.bf16.mxu0 %v2695_v0 }
 0xff6   :  { %2475 = vmatpush3.bf16.msra.mxu0 %v2803_v13 }
 0xff7   :  { %2484 = vmatprep.subr.bf16.mxu0 %v2695_v0 }
0x10c4   :  { %v774_v61 = vpop.f32.mrb[6].mxu0 }
0x10c5   :  { %v785_v62 = vadd.f32 %v774_v61, %v2826_v19  ;;  %v2291_v63 = vpop.f32.mrb[7].mxu0  ;;  %v778_v3 = vadd.f32 %v774_v61, %v705_v2 }
0x10c6   :  { %v1029_v63 = vld [vmem:[%s3103_s5] sm:$0xff] }
0x10c7   :  { %787 = vrot.lane.b32.xlu0 %v785_v62, %s2698_s23  ;;  %v2098_v4 = vmul.f32 -1.442695, %v778_v3 }
0x10c9   :  { %2578 = vpow2.f32 %v2098_v4  ;;  %v1031_v4 = vld [vmem:[%s3103_s5 + $0x10] sm:$0xff] }
0x10d3   :  { %v2579_v8 = vpop.eup %2578 }
0x10d4   :  { %v782_v5 = vadd.f32 1.0, %v2579_v8  ;;  %v1032_v8 = vld [vmem:[%s3103_s5 + $0x18] sm:$0xff] }
0x10d6   :  { %2580 = vrcp.f32 %v782_v5  ;;  %v2480_v5 = vpack.c.bf16 %v1032_v8, %v1031_v4 }
0x10e0   :  { %v2581_v6 = vpop.eup %2580 }
0x1139   :  { %v788_v7 = vpop.permute.xlu0 %787 }
0x113a   :  { %v790_v9 = vmul.f32 %v2581_v6, %v788_v7 }
0x113c   :  { %792 = vrot.lane.b32.xlu1 %v790_v9, %s2698_s23 }
0x11ae   :  { %v793_v13 = vpop.permute.xlu1 %792 }
0x11af   :  { %v795_v10 = vadd.f32 %v793_v13, %v705_v2  ;;  %v1030_v2 = vld [vmem:[%s3103_s5 + $0x8] sm:$0xff] }
0x11b0   :  { %v2476_v3 = vpack.c.bf16 %v1030_v2, %v1029_v63 }
0x11b1   :  { %2582 = vtanh.f32 %v795_v10 }
0x11b2   :  { %2477 = vmatprep.subr.bf16.mxu1 %v2476_v3 }
0x11bb   :  { %v2583_v11 = vpop.eup %2582 }
0x11bc   :  { %v797_v12 = vsub.f32 %v699_v59, %v2583_v11  ;;  %v1036_v59 = vld [vmem:[%s3104_s6 + $0x18] sm:$0xff] }
0x11bd   :  { %v2937_v60 = vpack.c.bf16 %v1036_v59, %v1035_v57 }
0x11be   :  { %799 = vrot.lane.b32.xlu0 %v797_v12, %s2699_s3 }
0x1230   :  { %v800_v14 = vpop.permute.xlu0 %799 }
0x1231   :  { %v802_v15 = vmul.f32 %v2581_v6, %v800_v14  ;;  %v2103_v6 = vld [vmem:[%s3106_s8] ss:$0 sm:$0xff] }
0x1233   :  { %804 = vrot.lane.b32.xlu1 %v802_v15, %s2700_s4 }
0x12a5   :  { %v805_v16 = vpop.permute.xlu1 %804 }
0x12a6   :  { %v807_v17 = vadd.f32 %v2583_v11, %v805_v16  ;;  %v2104_v16 = vld [vmem:[%s3105_s7] ss:$0 sm:$0xff] }
0x12a8   :  { %809 = vrot.lane.b32.xlu0 %v807_v17, %s2698_s23 }
0x131a   :  { %v810_v18 = vpop.permute.xlu0 %809 }
0x131b   :  { %812 = vst.msk [vmem:[#allocation3 + $0xa] sm:$0x3] %vm271_vm3, %v810_v18  ;;  %2301 = vmatmul.mubr.msk.f32.vlgmr.msra.gmra.mrb[6].mxu1 %vm160_vm4, %v810_v18 }
0x131c   :  { %2322 = vmatprep.mubr.msk.f32.mxu1 %vm160_vm4, %v1044_v20  ;;  %2479 = vmatpush3.bf16.msra.mxu1 %v2476_v3 }
0x131d   :  { %2481 = vmatprep.subr.bf16.mxu1 %v2480_v5 }
0x1320   :  { %2483 = vmatpush3.bf16.msra.mxu1 %v2480_v5 }
0x1321   :  { %2490 = vmatprep.subr.bf16.mxu1 %v2695_v0 }
0x13ee   :  { %v882_v21 = vpop.f32.mrb[6].mxu1 }
0x13ef   :  { %v893_v22 = vadd.f32 %v882_v21, %v2826_v19  ;;  %v2302_v23 = vpop.f32.mrb[7].mxu1  ;;  %v886_v25 = vadd.f32 %v882_v21, %v813_v24 }
0x13f1   :  { %895 = vrot.lane.b32.xlu1 %v893_v22, %s2698_s23  ;;  %v2100_v26 = vmul.f32 -1.442695, %v886_v25 }
0x13f3   :  { %2584 = vpow2.f32 %v2100_v26 }
0x13fd   :  { %v2585_v27 = vpop.eup %2584 }
0x13fe   :  { %v890_v28 = vadd.f32 1.0, %v2585_v27 }
0x1400   :  { %2586 = vrcp.f32 %v890_v28 }
0x140a   :  { %v2587_v29 = vpop.eup %2586 }
0x1463   :  { %v896_v30 = vpop.permute.xlu1 %895 }
0x1464   :  { %v898_v31 = vmul.f32 %v2587_v29, %v896_v30 }
0x1466   :  { %900 = vrot.lane.b32.xlu0 %v898_v31, %s2698_s23 }
0x14d8   :  { %v901_v32 = vpop.permute.xlu0 %900 }
0x14d9   :  { %v903_v33 = vadd.f32 %v901_v32, %v813_v24 }
0x14db   :  { %2588 = vtanh.f32 %v903_v33 }
0x14e5   :  { %v2589_v34 = vpop.eup %2588 }
0x14e6   :  { %v905_v35 = vsub.f32 %v807_v17, %v2589_v34 }
0x14e8   :  { %907 = vrot.lane.b32.xlu1 %v905_v35, %s2699_s3 }
0x155a   :  { %v908_v36 = vpop.permute.xlu1 %907 }
0x155b   :  { %v910_v37 = vmul.f32 %v2587_v29, %v908_v36 }
0x155d   :  { %912 = vrot.lane.b32.xlu0 %v910_v37, %s2700_s4 }
0x15cf   :  { %v913_v38 = vpop.permute.xlu0 %912 }
0x15d0   :  { %v915_v39 = vadd.f32 %v2589_v34, %v913_v38 }
0x15d2   :  { %917 = vrot.lane.b32.xlu1 %v915_v39, %s2698_s23 }
0x1644   :  { %v918_v40 = vpop.permute.xlu1 %917 }
0x1645   :  { %920 = vst.msk [vmem:[#allocation3 + $0xc] sm:$0x3] %vm271_vm3, %v918_v40  ;;  %2312 = vmatmul.mubr.msk.f32.vlgmr.msra.gmra.mrb[8].mxu0 %vm160_vm4, %v918_v40 }
0x1646   :  { %2333 = vmatprep.mubr.msk.f32.mxu0 %vm2696_vm0, %v2697_v1  ;;  %2486 = vmatpush3.bf16.msra.mxu0 %v2931_v58 }
0x1647   :  { %2487 = vmatprep.subr.bf16.mxu0 %v2695_v0 }
0x164a   :  { %2489 = vmatpush3.bf16.msra.mxu0 %v2937_v60 }
0x164b   :  { %2496 = vmatprep.subr.bf16.mxu0 %v2695_v0 }
0x164d   :  { %2334 = vmatmul.mubr.f32.vlgmr.msra.gmra.mrb[10].mxu0 %v2697_v1 }
0x164e   :  { %2498 = vmatpush3.bf16.msra.mxu0 %v2931_v58  ;;  %2355 = vmatprep.mubr.msk.f32.mxu0 %vm2696_vm0, %v2697_v1 }
0x164f   :  { %2499 = vmatprep.subr.bf16.mxu0 %v2695_v0 }
0x1652   :  { %2501 = vmatpush3.bf16.msra.mxu0 %v2937_v60 }
0x1653   :  { %2508 = vmatprep.subr.bf16.mxu0 %v2695_v0 }
0x1718   :  { %v990_v41 = vpop.f32.mrb[8].mxu0 }
0x1719   :  { %v1001_v42 = vadd.f32 %v990_v41, %v2826_v19  ;;  %v2313_v43 = vpop.f32.mrb[9].mxu0  ;;  %v994_v45 = vadd.f32 %v990_v41, %v921_v44 }
0x171b   :  { %1003 = vrot.lane.b32.xlu0 %v1001_v42, %s2698_s23  ;;  %v2102_v46 = vmul.f32 -1.442695, %v994_v45 }
0x171d   :  { %2590 = vpow2.f32 %v2102_v46 }
0x1720   :  { %v1202_v13 = vpop.f32.mrb[10].mxu0 }
0x1721   :  { %v2335_v10 = vpop.f32.mrb[11].mxu0 }
0x1727   :  { %v2591_v47 = vpop.eup %2590 }
0x1728   :  { %v998_v48 = vadd.f32 1.0, %v2591_v47 }
0x172a   :  { %2592 = vrcp.f32 %v998_v48 }
0x1734   :  { %v2593_v49 = vpop.eup %2592 }
0x178d   :  { %v1004_v50 = vpop.permute.xlu0 %1003 }
0x178e   :  { %v1006_v51 = vmul.f32 %v2593_v49, %v1004_v50 }
0x1790   :  { %1008 = vrot.lane.b32.xlu1 %v1006_v51, %s2698_s23 }
0x1802   :  { %v1009_v52 = vpop.permute.xlu1 %1008 }
0x1803   :  { %v1011_v53 = vadd.f32 %v1009_v52, %v921_v44 }
0x1805   :  { %2594 = vtanh.f32 %v1011_v53 }
0x180f   :  { %v2595_v54 = vpop.eup %2594 }
0x1810   :  { %v1013_v19 = vsub.f32 %v915_v39, %v2595_v54 }
0x1812   :  { %1015 = vrot.lane.b32.xlu0 %v1013_v19, %s2699_s3 }
0x1884   :  { %v1016_v61 = vpop.permute.xlu0 %1015 }
0x1885   :  { %v1018_v62 = vmul.f32 %v2593_v49, %v1016_v61 }
0x1887   :  { %1020 = vrot.lane.b32.xlu1 %v1018_v62, %s2700_s4 }
0x188b   :  { %1213 = vrot.lane.b32.xlu1 %v2103_v6, %s2698_s23 }
0x18f9   :  { %v1021_v7 = vpop.permute.xlu1 %1020 }
0x18fa   :  { %v1023_v9 = vadd.f32 %v2595_v54, %v1021_v7 }
0x18fc   :  { %1025 = vrot.lane.b32.xlu0 %v1023_v9, %s2698_s23 }
0x18fd   :  { %v2968_v11 = vpop.permute.xlu1 %1213 }
0x18fe   :  { %v1216_v12 = vadd.f32 %v2968_v11, %v1202_v13 }
0x1900   :  { %1218 = vrot.lane.b32.xlu0 %v1216_v12, %s2698_s23 }
0x196e   :  { %v1026_v14 = vpop.permute.xlu0 %1025 }
0x196f   :  { %1028 = vst.msk [vmem:[#allocation3 + $0xe] sm:$0x3] %vm271_vm3, %v1026_v14 }
0x1972   :  { %v1219_v27 = vpop.permute.xlu0 %1218 }
0x1976   :  { %v1045_v15 = vld [vmem:[#allocation3 + $0x8] sm:$0xff] }
0x1977   :  { %2323 = vmatmul.mubr.msk.f32.vlgmr.msra.gmra.mrb[8].mxu1 %vm160_vm4, %v1045_v15 }
0x1978   :  { %2492 = vmatpush3.bf16.msra.mxu1 %v2931_v58  ;;  %2344 = vmatprep.mubr.msk.f32.mxu1 %vm2696_vm0, %v2697_v1 }
0x1979   :  { %2493 = vmatprep.subr.bf16.mxu1 %v2695_v0 }
0x197c   :  { %2495 = vmatpush3.bf16.msra.mxu1 %v2937_v60 }
0x197d   :  { %2502 = vmatprep.subr.bf16.mxu1 %v2695_v0 }
0x1a4a   :  { %v2324_v17 = vpop.f32.mrb[8].mxu1 }
0x1a4b   :  { %v1130_v18 = vadd.f32 %v2324_v17, %v2104_v16  ;;  %v1124_v20 = vpop.f32.mrb[9].mxu1 }
0x1a4c   :  { %v1125_v21 = vadd.f32 %v2104_v16, %v1124_v20 }
0x1a4d   :  { %1134 = vst.msk [vmem:[#allocation2 + $0x8] sm:$0xff] %vm156_vm2, %v1130_v18 }
0x1a4e   :  { %1133 = vst.msk [vmem:[#allocation2] sm:$0xff] %vm156_vm2, %v1125_v21 }
0x1a55   :  { %v1135_v22 = vld [vmem:[#allocation2] sm:$0x3]  ;;  %v1239_v42 = vld [vmem:[#allocation2 + $0x2] sm:$0x3]  ;;  %v1345_v63 = vld [vmem:[#allocation2 + $0x4] sm:$0x3] }
0x1a56   :  { %v1206_v23 = vadd.f32 %v1202_v13, %v1135_v22 }
0x1a58   :  { %v2107_v24 = vmul.f32 -1.442695, %v1206_v23  ;;  %v1451_v23 = vld [vmem:[#allocation2 + $0x6] sm:$0x3] }
0x1a5a   :  { %2596 = vpow2.f32 %v2107_v24 }
0x1a64   :  { %v2597_v25 = vpop.eup %2596 }
0x1a65   :  { %v1210_v26 = vadd.f32 1.0, %v2597_v25 }
0x1a67   :  { %2598 = vrcp.f32 %v1210_v26 }
0x1a71   :  { %v2599_v28 = vpop.eup %2598 }
0x1a72   :  { %v1221_v29 = vmul.f32 %v2599_v28, %v1219_v27 }
0x1a74   :  { %1223 = vrot.lane.b32.xlu1 %v1221_v29, %s2698_s23 }
0x1ae6   :  { %v1224_v30 = vpop.permute.xlu1 %1223 }
0x1ae7   :  { %v1226_v31 = vadd.f32 %v1224_v30, %v1135_v22 }
0x1ae9   :  { %2600 = vtanh.f32 %v1226_v31 }
0x1af3   :  { %v2601_v32 = vpop.eup %2600 }
0x1af4   :  { %v1228_v33 = vsub.f32 0.0, %v2601_v32 }
0x1af6   :  { %1230 = vrot.lane.b32.xlu0 %v1228_v33, %s2699_s3 }
0x1b68   :  { %v1231_v34 = vpop.permute.xlu0 %1230 }
0x1b69   :  { %v1233_v35 = vmul.f32 %v2599_v28, %v1231_v34 }
0x1b6b   :  { %1235 = vrot.lane.b32.xlu1 %v1233_v35, %s2700_s4 }
0x1bdd   :  { %v1236_v36 = vpop.permute.xlu1 %1235 }
0x1bde   :  { %v1238_v37 = vadd.f32 %v2601_v32, %v1236_v36 }
0x1be0   :  { %1241 = vrot.lane.b32.xlu0 %v1238_v37, %s2698_s23 }
0x1c52   :  { %v1242_v38 = vpop.permute.xlu0 %1241 }
0x1c53   :  { %2345 = vmatmul.mubr.msk.f32.vlgmr.msra.gmra.mrb[10].mxu1 %vm160_vm4, %v1242_v38 }
0x1c54   :  { %2504 = vmatpush3.bf16.msra.mxu1 %v2931_v58  ;;  %2366 = vmatprep.mubr.msk.f32.mxu1 %vm2696_vm0, %v2697_v1 }
0x1c55   :  { %2505 = vmatprep.subr.bf16.mxu1 %v2695_v0 }
0x1c58   :  { %2507 = vmatpush3.bf16.msra.mxu1 %v2937_v60 }
0x1c59   :  { %2514 = vmatprep.subr.bf16.mxu1 %v2695_v0 }
0x1d26   :  { %v1311_v39 = vpop.f32.mrb[10].mxu1 }
0x1d27   :  { %v1322_v40 = vadd.f32 %v1311_v39, %v2968_v11  ;;  %v2346_v41 = vpop.f32.mrb[11].mxu1  ;;  %v1315_v43 = vadd.f32 %v1311_v39, %v1239_v42 }
0x1d29   :  { %1324 = vrot.lane.b32.xlu1 %v1322_v40, %s2698_s23  ;;  %v2109_v44 = vmul.f32 -1.442695, %v1315_v43  ;;  %v1557_v43 = vld [vmem:[#allocation2 + $0x8] sm:$0x3] }
0x1d2b   :  { %2602 = vpow2.f32 %v2109_v44 }
0x1d35   :  { %v2603_v45 = vpop.eup %2602 }
0x1d36   :  { %v1319_v46 = vadd.f32 1.0, %v2603_v45 }
0x1d38   :  { %2604 = vrcp.f32 %v1319_v46 }
0x1d42   :  { %v2605_v47 = vpop.eup %2604 }
0x1d9b   :  { %v1325_v48 = vpop.permute.xlu1 %1324 }
0x1d9c   :  { %v1327_v49 = vmul.f32 %v2605_v47, %v1325_v48 }
0x1d9e   :  { %1329 = vrot.lane.b32.xlu0 %v1327_v49, %s2698_s23 }
0x1e10   :  { %v1330_v50 = vpop.permute.xlu0 %1329 }
0x1e11   :  { %v1332_v51 = vadd.f32 %v1330_v50, %v1239_v42 }
0x1e13   :  { %2606 = vtanh.f32 %v1332_v51 }
0x1e1d   :  { %v2607_v52 = vpop.eup %2606 }
0x1e1e   :  { %v1334_v53 = vsub.f32 %v1238_v37, %v2607_v52 }
0x1e20   :  { %1336 = vrot.lane.b32.xlu1 %v1334_v53, %s2699_s3 }
0x1e92   :  { %v1337_v54 = vpop.permute.xlu1 %1336 }
0x1e93   :  { %v1339_v19 = vmul.f32 %v2605_v47, %v1337_v54 }
0x1e95   :  { %1341 = vrot.lane.b32.xlu0 %v1339_v19, %s2700_s4 }
0x1f07   :  { %v1342_v55 = vpop.permute.xlu0 %1341 }
0x1f08   :  { %v1344_v56 = vadd.f32 %v2607_v52, %v1342_v55 }
0x1f0a   :  { %1347 = vrot.lane.b32.xlu1 %v1344_v56, %s2698_s23 }
0x1f7c   :  { %v1348_v57 = vpop.permute.xlu1 %1347 }
0x1f7d   :  { %2356 = vmatmul.mubr.msk.f32.vlgmr.msra.gmra.mrb[12].mxu0 %vm160_vm4, %v1348_v57 }
0x1f7e   :  { %2510 = vmatpush3.bf16.msra.mxu0 %v2931_v58  ;;  %2377 = vmatprep.mubr.msk.f32.mxu0 %vm2696_vm0, %v2697_v1 }
0x1f7f   :  { %2511 = vmatprep.subr.bf16.mxu0 %v2695_v0 }
0x1f82   :  { %2513 = vmatpush3.bf16.msra.mxu0 %v2937_v60 }
0x1f83   :  { %2520 = vmatprep.subr.bf16.mxu0 %v2695_v0 }
0x2050   :  { %v1417_v59 = vpop.f32.mrb[12].mxu0 }
0x2051   :  { %v1428_v61 = vadd.f32 %v1417_v59, %v2968_v11  ;;  %v2357_v62 = vpop.f32.mrb[13].mxu0  ;;  %v1421_v2 = vadd.f32 %v1417_v59, %v1345_v63 }
0x2053   :  { %1430 = vrot.lane.b32.xlu0 %v1428_v61, %s2698_s23  ;;  %v2111_v3 = vmul.f32 -1.442695, %v1421_v2  ;;  %v1663_v2 = vld [vmem:[#allocation2 + $0xa] sm:$0x3] }
0x2055   :  { %2608 = vpow2.f32 %v2111_v3 }
0x205f   :  { %v2609_v4 = vpop.eup %2608 }
0x2060   :  { %v1425_v8 = vadd.f32 1.0, %v2609_v4 }
0x2062   :  { %2610 = vrcp.f32 %v1425_v8 }
0x206c   :  { %v2611_v5 = vpop.eup %2610 }
0x20c5   :  { %v1431_v6 = vpop.permute.xlu0 %1430 }
0x20c6   :  { %v1433_v7 = vmul.f32 %v2611_v5, %v1431_v6 }
0x20c8   :  { %1435 = vrot.lane.b32.xlu1 %v1433_v7, %s2698_s23 }
0x213a   :  { %v1436_v9 = vpop.permute.xlu1 %1435 }
0x213b   :  { %v1438_v13 = vadd.f32 %v1436_v9, %v1345_v63 }
0x213d   :  { %2612 = vtanh.f32 %v1438_v13 }
0x2147   :  { %v2613_v10 = vpop.eup %2612 }
0x2148   :  { %v1440_v12 = vsub.f32 %v1344_v56, %v2613_v10 }
0x214a   :  { %1442 = vrot.lane.b32.xlu0 %v1440_v12, %s2699_s3 }
0x21bc   :  { %v1443_v14 = vpop.permute.xlu0 %1442 }
0x21bd   :  { %v1445_v15 = vmul.f32 %v2611_v5, %v1443_v14 }
0x21bf   :  { %1447 = vrot.lane.b32.xlu1 %v1445_v15, %s2700_s4 }
0x2231   :  { %v1448_v16 = vpop.permute.xlu1 %1447 }
0x2232   :  { %v1450_v17 = vadd.f32 %v2613_v10, %v1448_v16 }
0x2234   :  { %1453 = vrot.lane.b32.xlu0 %v1450_v17, %s2698_s23 }
0x22a6   :  { %v1454_v18 = vpop.permute.xlu0 %1453 }
0x22a7   :  { %2367 = vmatmul.mubr.msk.f32.vlgmr.msra.gmra.mrb[12].mxu1 %vm160_vm4, %v1454_v18 }
0x22a8   :  { %2516 = vmatpush3.bf16.msra.mxu1 %v2931_v58  ;;  %2388 = vmatprep.mubr.msk.f32.mxu1 %vm2696_vm0, %v2697_v1 }
0x22a9   :  { %2517 = vmatprep.subr.bf16.mxu1 %v2695_v0 }
0x22ac   :  { %2519 = vmatpush3.bf16.msra.mxu1 %v2937_v60 }
0x22ad   :  { %2526 = vmatprep.subr.bf16.mxu1 %v2695_v0 }
0x237a   :  { %v1523_v20 = vpop.f32.mrb[12].mxu1 }
0x237b   :  { %v1534_v21 = vadd.f32 %v1523_v20, %v2968_v11  ;;  %v2368_v22 = vpop.f32.mrb[13].mxu1  ;;  %v1527_v24 = vadd.f32 %v1523_v20, %v1451_v23 }
0x237c   :  { %v1769_v22 = vld [vmem:[#allocation2 + $0xc] sm:$0x3] }
0x237d   :  { %1536 = vrot.lane.b32.xlu1 %v1534_v21, %s2698_s23  ;;  %v2113_v25 = vmul.f32 -1.442695, %v1527_v24 }
0x237f   :  { %2614 = vpow2.f32 %v2113_v25 }
0x2389   :  { %v2615_v26 = vpop.eup %2614 }
0x238a   :  { %v1531_v27 = vadd.f32 1.0, %v2615_v26 }
0x238c   :  { %2616 = vrcp.f32 %v1531_v27 }
0x2396   :  { %v2617_v28 = vpop.eup %2616 }
0x23ef   :  { %v1537_v29 = vpop.permute.xlu1 %1536 }
0x23f0   :  { %v1539_v30 = vmul.f32 %v2617_v28, %v1537_v29 }
0x23f2   :  { %1541 = vrot.lane.b32.xlu0 %v1539_v30, %s2698_s23 }
0x2464   :  { %v1542_v31 = vpop.permute.xlu0 %1541 }
0x2465   :  { %v1544_v32 = vadd.f32 %v1542_v31, %v1451_v23 }
0x2467   :  { %2618 = vtanh.f32 %v1544_v32 }
0x2471   :  { %v2619_v33 = vpop.eup %2618 }
0x2472   :  { %v1546_v34 = vsub.f32 %v1450_v17, %v2619_v33 }
0x2474   :  { %1548 = vrot.lane.b32.xlu1 %v1546_v34, %s2699_s3 }
0x24e6   :  { %v1549_v35 = vpop.permute.xlu1 %1548 }
0x24e7   :  { %v1551_v36 = vmul.f32 %v2617_v28, %v1549_v35 }
0x24e9   :  { %1553 = vrot.lane.b32.xlu0 %v1551_v36, %s2700_s4 }
0x255b   :  { %v1554_v37 = vpop.permute.xlu0 %1553 }
0x255c   :  { %v1556_v38 = vadd.f32 %v2619_v33, %v1554_v37 }
0x255e   :  { %1559 = vrot.lane.b32.xlu1 %v1556_v38, %s2698_s23 }
0x25d0   :  { %v1560_v39 = vpop.permute.xlu1 %1559 }
0x25d1   :  { %2378 = vmatmul.mubr.msk.f32.vlgmr.msra.gmra.mrb[14].mxu0 %vm160_vm4, %v1560_v39 }
0x25d2   :  { %2522 = vmatpush3.bf16.msra.mxu0 %v2931_v58  ;;  %2399 = vmatprep.mubr.msk.f32.mxu0 %vm2696_vm0, %v2697_v1 }
0x25d3   :  { %2523 = vmatprep.subr.bf16.mxu0 %v2695_v0 }
0x25d6   :  { %2525 = vmatpush3.bf16.msra.mxu0 %v2937_v60 }
0x25d7   :  { %2532 = vmatprep.subr.bf16.mxu0 %v2695_v0 }
0x26a4   :  { %v1629_v40 = vpop.f32.mrb[14].mxu0 }
0x26a5   :  { %v1640_v41 = vadd.f32 %v1629_v40, %v2968_v11  ;;  %v2379_v42 = vpop.f32.mrb[15].mxu0  ;;  %v1633_v44 = vadd.f32 %v1629_v40, %v1557_v43 }
0x26a7   :  { %1642 = vrot.lane.b32.xlu0 %v1640_v41, %s2698_s23  ;;  %v2115_v45 = vmul.f32 -1.442695, %v1633_v44  ;;  %v1875_v41 = vld [vmem:[#allocation2 + $0xe] sm:$0x3] }
0x26a9   :  { %2620 = vpow2.f32 %v2115_v45 }
0x26b3   :  { %v2621_v46 = vpop.eup %2620 }
0x26b4   :  { %v1637_v47 = vadd.f32 1.0, %v2621_v46 }
0x26b6   :  { %2622 = vrcp.f32 %v1637_v47 }
0x26c0   :  { %v2623_v48 = vpop.eup %2622 }
0x2719   :  { %v1643_v49 = vpop.permute.xlu0 %1642 }
0x271a   :  { %v1645_v50 = vmul.f32 %v2623_v48, %v1643_v49 }
0x271c   :  { %1647 = vrot.lane.b32.xlu1 %v1645_v50, %s2698_s23 }
0x278e   :  { %v1648_v51 = vpop.permute.xlu1 %1647 }
0x278f   :  { %v1650_v52 = vadd.f32 %v1648_v51, %v1557_v43 }
0x2791   :  { %2624 = vtanh.f32 %v1650_v52  ;;  %v1981_v52 = vld [vmem:[%s3107_s9] sm:$0xff] }
0x279b   :  { %v2625_v53 = vpop.eup %2624 }
0x279c   :  { %v1652_v54 = vsub.f32 %v1556_v38, %v2625_v53 }
0x279e   :  { %1654 = vrot.lane.b32.xlu0 %v1652_v54, %s2699_s3  ;;  %v1983_v54 = vld [vmem:[%s3107_s9 + $0x10] sm:$0xff] }
0x2810   :  { %v1655_v19 = vpop.permute.xlu0 %1654 }
0x2811   :  { %v1657_v55 = vmul.f32 %v2623_v48, %v1655_v19 }
0x2813   :  { %1659 = vrot.lane.b32.xlu1 %v1657_v55, %s2700_s4  ;;  %v1984_v55 = vld [vmem:[%s3107_s9 + $0x18] sm:$0xff] }
0x2885   :  { %v1660_v56 = vpop.permute.xlu1 %1659 }
0x2886   :  { %v1662_v57 = vadd.f32 %v2625_v53, %v1660_v56  ;;  %v1982_v53 = vld [vmem:[%s3107_s9 + $0x8] sm:$0xff]  ;;  %v2536_v56 = vpack.c.bf16 %v1984_v55, %v1983_v54  ;;  %s2701_s9 = smov [#allocation8]  }
0x2887   :  { %v2533_v19 = vpack.c.bf16 %v1982_v53, %v1981_v52  ;;  %s2075_s30 = sshll.u32 %s2701_s9, 4  ;;  %s2076_s30 = int_to_ptr.vmem [resolvable:$true] %s2075_s30 }
0x2888   :  { %1665 = vrot.lane.b32.xlu0 %v1662_v57, %s2698_s23  ;;  %p2671_p9 = scmp.lt.s32.totalorder %s2076_s30, %s2076_s30 }
0x28fa   :  { %v1666_v59 = vpop.permute.xlu0 %1665 }
0x28fb   :  { %2389 = vmatmul.mubr.msk.f32.vlgmr.msra.gmra.mrb[14].mxu1 %vm160_vm4, %v1666_v59 }
0x28fc   :  { %2528 = vmatpush3.bf16.msra.mxu1 %v2931_v58  ;;  %2410 = vmatprep.mubr.msk.f32.mxu1 %vm2696_vm0, %v2697_v1 }
0x28fd   :  { %2529 = vmatprep.subr.bf16.mxu1 %v2695_v0 }
0x2900   :  { %2531 = vmatpush3.bf16.msra.mxu1 %v2937_v60 }
0x29ce   :  { %v1735_v61 = vpop.f32.mrb[14].mxu1 }
0x29cf   :  { %v1746_v62 = vadd.f32 %v1735_v61, %v2968_v11  ;;  %v2390_v63 = vpop.f32.mrb[15].mxu1  ;;  %v1739_v3 = vadd.f32 %v1735_v61, %v1663_v2 }
0x29d1   :  { %1748 = vrot.lane.b32.xlu1 %v1746_v62, %s2698_s23  ;;  %v2117_v4 = vmul.f32 -1.442695, %v1739_v3 }
0x29d3   :  { %2626 = vpow2.f32 %v2117_v4 }
0x29dd   :  { %v2627_v8 = vpop.eup %2626 }
0x29de   :  { %v1743_v5 = vadd.f32 1.0, %v2627_v8 }
0x29e0   :  { %2628 = vrcp.f32 %v1743_v5 }
0x29ea   :  { %v2629_v58 = vpop.eup %2628 }
0x2a43   :  { %v1749_v6 = vpop.permute.xlu1 %1748 }
0x2a44   :  { %v1751_v7 = vmul.f32 %v2629_v58, %v1749_v6 }
0x2a46   :  { %1753 = vrot.lane.b32.xlu0 %v1751_v7, %s2698_s23 }
0x2ab8   :  { %v1754_v9 = vpop.permute.xlu0 %1753 }
0x2ab9   :  { %v1756_v60 = vadd.f32 %v1754_v9, %v1663_v2  ;;  %v2122_v2 = vld [vmem:[%s3108_s10] ss:$0 sm:$0xff] }
0x2abb   :  { %2630 = vtanh.f32 %v1756_v60 }
0x2ac5   :  { %v2631_v13 = vpop.eup %2630 }
0x2ac6   :  { %v1758_v10 = vsub.f32 %v1662_v57, %v2631_v13 }
0x2ac8   :  { %1760 = vrot.lane.b32.xlu1 %v1758_v10, %s2699_s3 }
0x2b3a   :  { %v1761_v12 = vpop.permute.xlu1 %1760 }
0x2b3b   :  { %v1763_v14 = vmul.f32 %v2629_v58, %v1761_v12 }
0x2b3d   :  { %1765 = vrot.lane.b32.xlu0 %v1763_v14, %s2700_s4 }
0x2baf   :  { %v1766_v15 = vpop.permute.xlu0 %1765 }
0x2bb0   :  { %v1768_v16 = vadd.f32 %v2631_v13, %v1766_v15 }
0x2bb2   :  { %1771 = vrot.lane.b32.xlu1 %v1768_v16, %s2698_s23 }
0x2c24   :  { %v1772_v17 = vpop.permute.xlu1 %1771 }
0x2c25   :  { %2400 = vmatmul.mubr.msk.f32.vlgmr.msra.gmra.mrb[16].mxu0 %vm160_vm4, %v1772_v17 }
0x2c26   :  { %2421 = vmatprep.mubr.msk.f32.mxu0 %vm2696_vm0, %v2697_v1  ;;  %2534 = vmatpush3.bf16.msra.mxu0 %v2533_v19 }
0x2c27   :  { %2535 = vmatprep.subr.bf16.mxu0 %v2695_v0 }
0x2c2a   :  { %2537 = vmatpush3.bf16.msra.mxu0 %v2536_v56 }
0x2cf8   :  { %v1841_v18 = vpop.f32.mrb[16].mxu0 }
0x2cf9   :  { %v1852_v20 = vadd.f32 %v1841_v18, %v2968_v11  ;;  %v2401_v21 = vpop.f32.mrb[17].mxu0  ;;  %v1845_v23 = vadd.f32 %v1841_v18, %v1769_v22 }
0x2cfb   :  { %1854 = vrot.lane.b32.xlu0 %v1852_v20, %s2698_s23  ;;  %v2119_v24 = vmul.f32 -1.442695, %v1845_v23 }
0x2cfd   :  { %2632 = vpow2.f32 %v2119_v24 }
0x2d07   :  { %v2633_v25 = vpop.eup %2632 }
0x2d08   :  { %v1849_v26 = vadd.f32 1.0, %v2633_v25 }
0x2d0a   :  { %2634 = vrcp.f32 %v1849_v26 }
0x2d14   :  { %v2635_v27 = vpop.eup %2634 }
0x2d6d   :  { %v1855_v28 = vpop.permute.xlu0 %1854 }
0x2d6e   :  { %v1857_v29 = vmul.f32 %v2635_v27, %v1855_v28 }
0x2d70   :  { %1859 = vrot.lane.b32.xlu1 %v1857_v29, %s2698_s23 }
0x2de2   :  { %v1860_v30 = vpop.permute.xlu1 %1859 }
0x2de3   :  { %v1862_v1 = vadd.f32 %v1860_v30, %v1769_v22 }
0x2de5   :  { %2636 = vtanh.f32 %v1862_v1 }
0x2def   :  { %v2637_v31 = vpop.eup %2636 }
0x2df0   :  { %v1864_v32 = vsub.f32 %v1768_v16, %v2637_v31 }
0x2df2   :  { %1866 = vrot.lane.b32.xlu0 %v1864_v32, %s2699_s3 }
0x2e64   :  { %v1867_v33 = vpop.permute.xlu0 %1866 }
0x2e65   :  { %v1869_v34 = vmul.f32 %v2635_v27, %v1867_v33 }
0x2e67   :  { %1871 = vrot.lane.b32.xlu1 %v1869_v34, %s2700_s4 }
0x2ed9   :  { %v1872_v35 = vpop.permute.xlu1 %1871 }
0x2eda   :  { %v1874_v36 = vadd.f32 %v2637_v31, %v1872_v35 }
0x2edc   :  { %1877 = vrot.lane.b32.xlu0 %v1874_v36, %s2698_s23 }
0x2f4e   :  { %v1878_v37 = vpop.permute.xlu0 %1877 }
0x2f4f   :  { %2411 = vmatmul.mubr.msk.f32.vlgmr.msra.gmra.mrb[16].mxu1 %vm160_vm4, %v1878_v37 }
0x3022   :  { %v1947_v38 = vpop.f32.mrb[16].mxu1 }
0x3023   :  { %v1958_v39 = vadd.f32 %v1947_v38, %v2968_v11  ;;  %v2412_v40 = vpop.f32.mrb[17].mxu1  ;;  %v1951_v42 = vadd.f32 %v1947_v38, %v1875_v41 }
0x3025   :  { %1960 = vrot.lane.b32.xlu1 %v1958_v39, %s2698_s23  ;;  %v2121_v43 = vmul.f32 -1.442695, %v1951_v42 }
0x3027   :  { %2638 = vpow2.f32 %v2121_v43 }
0x3031   :  { %v2639_v44 = vpop.eup %2638 }
0x3032   :  { %v1955_v45 = vadd.f32 1.0, %v2639_v44 }
0x3034   :  { %2640 = vrcp.f32 %v1955_v45 }
0x303e   :  { %v2641_v46 = vpop.eup %2640 }
0x3097   :  { %v1961_v47 = vpop.permute.xlu1 %1960 }
0x3098   :  { %v1963_v48 = vmul.f32 %v2641_v46, %v1961_v47 }
0x309a   :  { %1965 = vrot.lane.b32.xlu0 %v1963_v48, %s2698_s23 }
0x310c   :  { %v1966_v49 = vpop.permute.xlu0 %1965 }
0x310d   :  { %v1968_v50 = vadd.f32 %v1966_v49, %v1875_v41 }
0x310f   :  { %2642 = vtanh.f32 %v1968_v50 }
0x3119   :  { %v2643_v51 = vpop.eup %2642 }
0x311a   :  { %v1970_v11 = vsub.f32 %v1874_v36, %v2643_v51 }
0x311c   :  { %1972 = vrot.lane.b32.xlu1 %v1970_v11, %s2699_s3 }
0x318e   :  { %v1973_v57 = vpop.permute.xlu1 %1972 }
0x318f   :  { %v1975_v59 = vmul.f32 %v2641_v46, %v1973_v57 }
0x3191   :  { %1977 = vrot.lane.b32.xlu0 %v1975_v59, %s2700_s4  ;;  %s2666_s4 = scalar_lea.vmem %s2076_s30, 32 }
0x3192   :  { %p2667_p8 = scmp.ne.s32.totalorder %s2076_s30, %s2666_s4  ;;  %p2672_p10 = scmp.lt.s32.totalorder %s2666_s4, %s2666_s4 }
0x3194   :  { %p2673_p11 = por %p2672_p10, %p2671_p9 }
0x3196   :  { %p2674_p12 = pnand %p2673_p11, %p2667_p8 }
0x3203   :  { %v1978_v61 = vpop.permute.xlu0 %1977 }
0x3204   :  { %v1980_v62 = vadd.f32 %v2643_v51, %v1978_v61 }
0x3206   :  { %1993 = vrot.lane.b32.xlu1 %v1980_v62, %s2698_s23 }
0x3278   :  { %v1994_v63 = vpop.permute.xlu1 %1993 }
0x3279   :  { %2422 = vmatmul.mubr.msk.f32.vlgmr.msra.gmra.mrb[18].mxu0 %vm160_vm4, %v1994_v63 }
0x334c   :  { %v2063_v3 = vpop.f32.mrb[18].mxu0 }
0x334d   :  { %v2064_v0 = vadd.f32 %v2122_v2, %v2063_v3  ;;  %v2423_v4 = vpop.f32.mrb[19].mxu0 }
0x334f   :  { %2068 = vst.msk [vmem:[#allocation8] sm:$0x3] %vm2067_vm5, %v2064_v0 }
0x3350   :  { %2677 = shalt.err (!%p2674_p12)
}
0x3351   :  { %s2678_s13 = scalar_lea.hbm %s3109_s11, 32 }
0x3352   :  { %p2679_p13 = scmp.ne.s32.totalorder %s3109_s11, %s2678_s13  ;;  %p2682_p0 = scmp.lt.u32.totalorder %s2678_s13, %s3109_s11 }
0x3354   :  { %p2684_p1 = pnand %p2682_p0, %p2679_p13 }
0x3356   :  { %2687 = shalt.err (!%p2684_p1)
}
0x3357   :  { %2078 = dma.vmem_to_hbm [thread:$0]  %s2076_s30, 32, %s3109_s11, [#allocation7]  }
0x3358   :  { %2690 = dma.done.wait [#allocation7], 32  }
0x3359   :  { %2691 = vsyncadd [#allocation7], 4294967264 }
0x335a   :  { %2082 = vsyncpa [#allocation6], 1 }
0x335b   :  { %2083 = vsyncpa [#allocation7], 1 }

</bundles_post_ra>
